<compile_context>
chip_gen: v5e
topology: v5e:2x2
jax: 0.10.0
libtpu: 0.0.40
codegen_flags: <defaults>
</compile_context>

<pallas_src>
import jax
import jax.numpy as jnp
from jax import lax
from jax.experimental import pallas as pl
from jax.experimental.pallas import tpu as pltpu


def aggregator_kernel(w_ref, idx_ref, sn_ref, gcn_ref, out_ref):
    # w_ref   : SMEM (2,)    f32   -> [w1, w2] parameters of weighted_sum()
    # idx_ref : VMEM (TB, 1) int32 -> indices for this row tile
    # sn_ref  : VMEM (TB, D)       -> from_sn rows for this tile
    # gcn_ref : VMEM (N, D)        -> full gcn_op node table (VMEM-resident)
    # out_ref : VMEM (TB, D)       -> aggregated output rows
    idx = idx_ref[...]                               # (TB, 1) int32
    tb = idx.shape[0]
    n_nodes = gcn_ref.shape[0]

    # Batched gather as a one-hot matmul on the MXU. Decouples tile size from the
    # gather granularity and never touches out-of-range rows.
    node_iota = lax.broadcasted_iota(jnp.int32, (tb, n_nodes), 1)
    one_hot = (idx == node_iota).astype(gcn_ref.dtype)          # (TB, N)
    gathered = jnp.dot(
        one_hot,
        gcn_ref[...],
        preferred_element_type=jnp.float32,
        precision=lax.Precision.HIGHEST,                        # exact f32 gather
    )                                                           # (TB, D)

    out_ref[...] = (w_ref[0] * sn_ref[...] + w_ref[1] * gathered).astype(out_ref.dtype)


def aggregator(from_sn, gcn_op, indices, weights, *, tb=None):
    """x = w1 * from_sn + w2 * gcn_op[indices]   (Aggregator.weighted_sum)."""
    B, D = from_sn.shape
    n_nodes, d2 = gcn_op.shape
    assert d2 == D, "feature dims of from_sn and gcn_op must match"

    # Row-tile size: large multiple of 8 (f32 sublane granularity), capped by B.
    if tb is None:
        tb = min(512, B)
    tb = max(8, (min(tb, B) // 8) * 8)

    idx2d = indices.astype(jnp.int32).reshape(B, 1)
    grid = (pl.cdiv(B, tb),)

    # VMEM budget: resident table (double-buffer slack) + tiled in/out buffers.
    # Only raise the scoped limit if we actually exceed the ~32 MiB default.
    table_bytes = n_nodes * D * jnp.dtype(gcn_op.dtype).itemsize
    tile_bytes = tb * D * jnp.dtype(from_sn.dtype).itemsize
    est_bytes = 2 * table_bytes + 6 * tile_bytes + (2 << 20)
    vmem_limit = int(min(est_bytes, 100 << 20)) if est_bytes > (32 << 20) else None

    return pl.pallas_call(
        aggregator_kernel,
        out_shape=jax.ShapeDtypeStruct((B, D), from_sn.dtype),
        grid=grid,
        in_specs=[
            # weighted_sum parameters, untiled, in scalar memory
            pl.BlockSpec(memory_space=pltpu.MemorySpace.SMEM),
            # indices for this row tile
            pl.BlockSpec((tb, 1), lambda i: (i, 0)),
            # from_sn rows for this tile
            pl.BlockSpec((tb, D), lambda i: (i, 0)),
            # full gcn_op table, resident across all grid steps
            pl.BlockSpec((n_nodes, D), lambda i: (0, 0)),
        ],
        out_specs=pl.BlockSpec((tb, D), lambda i: (i, 0)),
        compiler_params=pltpu.CompilerParams(
            dimension_semantics=("parallel",),
            vmem_limit_bytes=vmem_limit,
        ),
    )(weights, idx2d, from_sn, gcn_op)


if __name__ == "__main__":
    key = jax.random.PRNGKey(0)
    B, D, N_NODES = 64, 256, 160
    k1, k2, k3 = jax.random.split(key, 3)

    # Synthetic stand-ins for the outputs of the two frozen upstream models.
    from_sn = jax.random.normal(k1, (B, D), dtype=jnp.float32)       # sn_model(...)
    gcn_op = jax.random.normal(k2, (N_NODES, D), dtype=jnp.float32)  # gcn_model(g, features)
    indices = jax.random.randint(k3, (B,), 0, N_NODES, dtype=jnp.int32)

    # Deterministic init of weighted_sum() parameters (two scalar weights).
    weights = jnp.array([0.6, 0.4], dtype=jnp.float32)

    out = aggregator(from_sn, gcn_op, indices, weights, tb=32)
    out = jax.block_until_ready(out)

    # Pure-JAX reference for the same computation.
    ref = weights[0] * from_sn + weights[1] * gcn_op[indices]
    assert out.shape == (B, D) and out.dtype == jnp.float32
    assert jnp.allclose(out, ref, atol=1e-4, rtol=1e-4), "mismatch vs reference"

    print("KERNEL_OK")
</pallas_src>

<mosaic_0001>
module attributes {stable_mosaic.version = 11 : i64} {
  func.func @aggregator_kernel(%arg0: i32, %arg1: memref<2xf32, #tpu.memory_space<smem>>, %arg2: memref<32x1xi32, #tpu.memory_space<vmem>>, %arg3: memref<32x256xf32, #tpu.memory_space<vmem>>, %arg4: memref<160x256xf32, #tpu.memory_space<vmem>>, %arg5: memref<32x256xf32, #tpu.memory_space<vmem>>) attributes {dimension_semantics = [#tpu.dimension_semantics<parallel>], iteration_bounds = array<i64: 2>, scalar_prefetch = 0 : i64, scratch_operands = 0 : i64, tpu.core_type = #tpu.core_type<tc>, window_params = [{transform_indices = @transform_0, window_bounds = array<i64: 2>}, {transform_indices = @transform_1, window_bounds = array<i64: 32, 1>}, {transform_indices = @transform_2, window_bounds = array<i64: 32, 256>}, {pipeline_mode = #tpu.pipeline_mode<synchronous>, transform_indices = @transform_3, window_bounds = array<i64: 160, 256>}, {transform_indices = @transform_4, window_bounds = array<i64: 32, 256>}]} {
    %c0 = arith.constant 0 : index
    %c0_0 = arith.constant 0 : index
    %0 = vector.load %arg2[%c0, %c0_0] : memref<32x1xi32, #tpu.memory_space<vmem>>, vector<32x1xi32>
    %1 = tpu.iota {dimensions = array<i32: 1>} : vector<32x160xi32>
    %2 = vector.broadcast %0 : vector<32x1xi32> to vector<32x160xi32>
    %3 = arith.cmpi eq, %2, %1 : vector<32x160xi32>
    %4 = arith.extui %3 : vector<32x160xi1> to vector<32x160xi32>
    %5 = arith.sitofp %4 : vector<32x160xi32> to vector<32x160xf32>
    %c0_1 = arith.constant 0 : index
    %c0_2 = arith.constant 0 : index
    %6 = vector.load %arg4[%c0_1, %c0_2] : memref<160x256xf32, #tpu.memory_space<vmem>>, vector<160x256xf32>
    %cst = arith.constant dense<0.000000e+00> : vector<32x256xf32>
    %7 = tpu.matmul %5, %6, %cst {dimension_numbers = #tpu.dot_dimension_numbers<[1], [0], [0], [1], [0, 0, 1, 1], [], []>, precision = #tpu.contract_precision<fp32>} : vector<32x160xf32>, vector<160x256xf32>, vector<32x256xf32> -> vector<32x256xf32>
    %c0_3 = arith.constant 0 : index
    %8 = memref.load %arg1[%c0_3] : memref<2xf32, #tpu.memory_space<smem>>
    %c0_4 = arith.constant 0 : index
    %c0_5 = arith.constant 0 : index
    %9 = vector.load %arg3[%c0_4, %c0_5] : memref<32x256xf32, #tpu.memory_space<vmem>>, vector<32x256xf32>
    %10 = vector.broadcast %8 : f32 to vector<32x256xf32>
    %11 = arith.mulf %10, %9 : vector<32x256xf32>
    %c1 = arith.constant 1 : index
    %12 = memref.load %arg1[%c1] : memref<2xf32, #tpu.memory_space<smem>>
    %13 = vector.broadcast %12 : f32 to vector<32x256xf32>
    %14 = arith.mulf %13, %7 : vector<32x256xf32>
    %15 = arith.addf %11, %14 : vector<32x256xf32>
    %c0_6 = arith.constant 0 : index
    %c0_7 = arith.constant 0 : index
    %16 = vector.load %arg5[%c0_6, %c0_7] : memref<32x256xf32, #tpu.memory_space<vmem>>, vector<32x256xf32>
    tpu.vector_store %arg5[%c0_6, %c0_7], %15 {strides = array<i32>} : memref<32x256xf32, #tpu.memory_space<vmem>>, vector<32x256xf32>,
    return
  }
  func.func @transform_0(%arg0: i32) -> i32 {
    %c0_i32 = arith.constant 0 : i32
    %c0_i32_0 = arith.constant 0 : i32
    return %c0_i32 : i32
  }
  func.func @transform_1(%arg0: i32) -> (i32, i32) {
    %c0_i32 = arith.constant 0 : i32
    %c0_i32_0 = arith.constant 0 : i32
    return %arg0, %c0_i32 : i32, i32
  }
  func.func @transform_2(%arg0: i32) -> (i32, i32) {
    %c0_i32 = arith.constant 0 : i32
    %c0_i32_0 = arith.constant 0 : i32
    return %arg0, %c0_i32 : i32, i32
  }
  func.func @transform_3(%arg0: i32) -> (i32, i32) {
    %c0_i32 = arith.constant 0 : i32
    %c0_i32_0 = arith.constant 0 : i32
    %c0_i32_1 = arith.constant 0 : i32
    return %c0_i32, %c0_i32_0 : i32, i32
  }
  func.func @transform_4(%arg0: i32) -> (i32, i32) {
    %c0_i32 = arith.constant 0 : i32
    %c0_i32_0 = arith.constant 0 : i32
    return %arg0, %c0_i32 : i32, i32
  }
}

</mosaic_0001>

<bundles_post_ra>
// kernel: tpu_custom_call.1
= control target key start
LH: loop header
LB: loop body
LE: loop exit
PB: predicated region body
PF: predicated region fallthrough
CT: control target
= control target key end

     0   :  { %s3357_s0 = inlined_call_operand.vmem [shape: f32[2], index: 0, kind: input, shape index: {}]   ;;  %s3358_s1 = inlined_call_operand.vmem [shape: s32[64,1], index: 1, kind: input, shape index: {}]   ;;  %s3359_s2 = inlined_call_operand.hbm [shape: f32[64,256], index: 2, kind: input, shape index: {}]   ;;  %s3360_s3 = inlined_call_operand.hbm [shape: f32[160,256], index: 3, kind: input, shape index: {}]   ;;  %s3361_s4 = inlined_call_operand.hbm [shape: f32[64,256], index: 4, kind: output, shape index: {}]  }
   0x1   :  { %3387 = sst [smem:[#allocation25_spill]] %s3357_s0 }
   0x2   :  { %3388 = sst [smem:[#allocation26_spill]] %s3360_s3 }
   0x3   :  { %9 = vsyncpa [#allocation5], 0 }
   0x4   :  { %10 = vsyncpa [#allocation3], 0 }
   0x5   :  { %12 = vsyncpa [#allocation3 + $0x1], 0 }
   0x6   :  { %13 = vsyncpa [#allocation8], 0 }
   0x7   :  { %14 = vsyncpa [#allocation4], 0 }
   0x8   :  { %16 = vsyncpa [#allocation4 + $0x1], 0  ;;  %s2306_s15 = smov 0   ;;  %s2308_s16 = smov 0  }
   0x9   :  { %s2310_s17 = smov 0   ;;  %s2312_s18 = smov 0  }
   0xa LB: > { %s2327_s19 = sadd.s32 4294967295, %s2270_s18   ;;  %s1962_s20 = sadd.s32 4294967294, %s2270_s18   ;;  %s2270_s18 = sphi %s2312_s18, %s3449_s18   ;;  %s2266_s17 = sphi %s2310_s17, %s3448_s17   ;;  %s2262_s16 = sphi %s2308_s16, %s3447_s16   ;;  %s2258_s15 = sphi %s2306_s15, %s3446_s15  }
   0xb   : > { %s2331_s21 = sadd.s32 1, %s2270_s18   ;;  %s76_s22 = sadd.s32 1, %s2266_s17 }
   0xc   : > { %s73_s23 = ssub.s32 %s2270_s18, %s2331_s21  ;;  %p83_p0 = scmp.ne.s32.totalorder %s2266_s17, %s2262_s16 }
   0xd   : > { %p74_p1 = scmp.eq.s32.totalorder %s73_s23, 0  ;;  %p84_p2 = scmp.eq.s32.totalorder %s2270_s18, 0 }
   0xe   : > { %p89_p3 = scmp.ne.s32.totalorder %s2262_s16, %s2258_s15  ;;  %p90_p4 = scmp.eq.s32.totalorder %s2327_s19, 0 }
   0xf   : > { %s2343_s24 = scalar_select %p74_p1, %s2266_s17, %s76_s22  }
  0x10   : > { %p2345_p5 = por %p84_p2, %p83_p0  ;;  %p2351_p6 = por %p90_p4, %p89_p3 }
  0x11   : > { %3389 = sst [smem:[#allocation14_spill]] %s2343_s24  ;;  %p134_p7 = scmp.eq.s32.totalorder %s2327_s19, 1 }
  0x12   : > { %p140_p8 = scmp.eq.s32.totalorder %s1962_s20, 1  ;;  %p1963_p9 = scmp.ge.s32.totalorder %s2270_s18, 1 }
  0x13   : > { %p147_p10 = scmp.lt.s32.totalorder %s2270_s18, 3  ;;  %p2358_p11 = por %p134_p7, %p83_p0 }
  0x14   : > { %p2362_p12 = por %p140_p8, %p89_p3  ;;  %s3395_s0 = sld [smem:[#allocation25_spill]] }
  0x15   : > { %p2366_p13 = pnand %p1963_p9, %p147_p10  ;;  %p2074_p2 = scmp.lt.s32.totalorder %s2270_s18, 2 }
  0x16   : > { %s3396_s3 = sld [smem:[#allocation26_spill]]  ;;  %s2272_s11 = smov [#allocation2]  }
  0x17   : > { %p2057_p1 = pneg %p2366_p13  ;;  %p2384_p7 = pnand %p2074_p2, %p2345_p5 }
  0x18   : > { %s2273_s12 = smov [#allocation7]   ;;  %s193_s14 = sand.u32 1, %s2266_s17  }
  0x19   : > { %p2058_p3 = pnand %p2057_p1, %p90_p4  ;;  %s170_s13 = sshll.u32 %s2273_s12, 4  ;;  %s171_s13 = int_to_ptr.vmem [resolvable:$true] %s170_s13 }
  0x1a   : > { %s159_s6 = sshll.u32 %s3395_s0, 4  ;;  %s2274_s20 = smov 256   ;;  %s160_s6 = int_to_ptr.vmem [resolvable:$true] %s159_s6 }
  0x1b   : > { %2060 = dma.vmem_to_smem (!%p2058_p3), %s160_s6, 16, %s2272_s11, [#allocation5]  }
  0x1c   : > { %s168_s9 = sshll.u32 %s3396_s3, 4  ;;  %s2275_s22 = smov 16   ;;  %s169_s9 = int_to_ptr.hbm [resolvable:$true] %s168_s9 }
  0x1d   : > { %2063 = dma.hbm_to_vmem [thread:$0]  (!%p2058_p3), %s169_s9, 5120, %s171_s13, [#allocation8], %s2274_s20, %s2274_s20, %s2275_s22  }
  0x1e   : > { %s1967_s23 = sshll.u32 %s193_s14, 6  ;;  %s2042_s30 = sshll.u32 %s2270_s18, 6 }
  0x1f   : > { %s203_s25 = scalar_lea.hbm %s3359_s2, %s2042_s30  ;;  %s197_s8 = scalar_lea.vmem [#allocation6], %s1967_s23 }
  0x20   : > { %s206_s0 = sshll.u32 %s197_s8, 4  ;;  %s204_s3 = sshll.u32 %s203_s25, 4  ;;  %s207_s0 = int_to_ptr.vmem [resolvable:$true] %s206_s0  ;;  %s205_s3 = int_to_ptr.hbm [resolvable:$true] %s204_s3 }
  0x21   : > { %s194_s6 = scalar_lea.sflag [#allocation3], %s193_s14  ;;  %s2166_s11 = sshra.s32 %s205_s3, 4  ;;  %s2167_s11 = int_to_ptr.hbm [resolvable:$true] %s2166_s11 }
  0x22   : > { %s2168_s12 = scalar_lea.hbm %s2167_s11, 64  ;;  %p2170_p8 = pneg %p2384_p7 }
  0x23   : > { %p2169_p5 = scmp.ne.s32.totalorder %s2167_s11, %s2168_s12  ;;  %s2173_s24 = scalar_lea.hbm %s3359_s2, 128 }
  0x24   : > { %p2174_p1 = scmp.lt.s32.totalorder %s2167_s11, %s3359_s2  ;;  %p2175_p2 = scmp.lt.s32.totalorder %s2173_s24, %s2168_s12 }
  0x25   : > { %p2171_p9 = pnand %p2170_p8, %p2169_p5 }
  0x26   : > { %p2176_p3 = por %p2175_p2, %p2174_p1 }
  0x27   : > { %p2172_p10 = pneg %p2171_p9 }
  0x29   : > { %p2177_p0 = pnand %p2176_p3, %p2172_p10 }
  0x2b   : > { %2180 = shalt.err (!%p2177_p0)
}
  0x2c   : > { %2067 = dma.hbm_to_vmem [thread:$0]  (!%p2384_p7), %s205_s3, 1024, %s207_s0, %s194_s6, %s2274_s20, %s2274_s20, %s2275_s22  }
  0x2d   : > { %218 = sbr.rel (%p2366_p13) target bundleno = 518 (0x206), region = 36 }
  0x32   : > { %2241 = dma.done.wait (%p90_p4), [#allocation5], 16  }
  0x33   : > { %2243 = vsyncadd (%p90_p4), [#allocation5], 4294967280  ;;  %s2410_s14 = sand.u32 1, %s2262_s16  }
  0x34   : > { %s1973_s24 = sshll.u32 %s2410_s14, 6  ;;  %s226_s23 = scalar_lea.sflag [#allocation3], %s2410_s14 }
  0x35   : > { %s2416_s0 = scalar_lea.vmem [#allocation6], %s1973_s24 }
  0x36   : > { %2245 = dma.done.wait (%p2351_p6), %s226_s23, 1024  }
  0x37   : > { %2247 = vsyncadd (%p2351_p6), %s226_s23, 4294966272 }
  0x38   : > { %2249 = dma.done.wait (%p90_p4), [#allocation8], 5120  }
  0x39   : > { %2251 = vsyncadd (%p90_p4), [#allocation8], 4294962176 }
  0x3a   : > { %240 = sfence }
  0x3b   : > { %s1976_s3 = sshll.u32 %s2327_s19, 2  ;;  %v347_v0 = vld [vmem:[#allocation7 + $0xf0] sm:$0xff]  ;;  %v345_v1 = vld [vmem:[#allocation7 + $0xe0] sm:$0xff]  ;;  %v2276_v3 = vmov 0   ;;  %vm357_vm5 = vcmask 261120   ;;  %s1794_s22 = sld [smem:[#allocation2]] }
  0x3c   : > { %v343_v2 = vld [vmem:[#allocation7 + $0xd0] sm:$0xff]  ;;  %2119 = vset.pattern.permute.xlu0 %v2276_v3  ;;  %p267_p13 = scmp.lt.s32.totalorder %s1976_s3, 7  ;;  %2120 = vset.pattern.permute.xlu1 %v2276_v3  ;;  %v2427_v4 = vand.u32 4294901760, %v347_v0  ;;  %v2429_v5 = vand.u32 4294901760, %v345_v1  ;;  %v341_v7 = vld [vmem:[#allocation7 + $0xc0] sm:$0xff]  ;;  %s2034_s7 = sld [smem:[#allocation2 + $0x1]] }
  0x3d   : > { %v2431_v6 = vand.u32 4294901760, %v343_v2  ;;  %v339_v8 = vld [vmem:[#allocation7 + $0xb0] sm:$0xff]  ;;  %v2433_v9 = vand.u32 4294901760, %v341_v7  ;;  %v337_v11 = vld [vmem:[#allocation7 + $0xa0] sm:$0xff]  ;;  %s3292_s25 = scalar_lea.vmem [#allocation9], %s1973_s24  ;;  %s2044_s8 = sshll.u32 %s2327_s19, 6 }
  0x3e   : > { %v2435_v10 = vand.u32 4294901760, %v339_v8  ;;  %v335_v12 = vld [vmem:[#allocation7 + $0x90] sm:$0xff]  ;;  %v333_v13 = vld [vmem:[#allocation7 + $0x80] sm:$0xff]  ;;  %s3451_s3 = smov (!%p267_p13, %s1976_s3), 7  ;;  %v2438_v14 = vsub.f32 %v347_v0, %v2427_v4  ;;  %v2441_v15 = vsub.f32 %v345_v1, %v2429_v5  ;;  %618 = vmatpush.msra.mxu3 %v2427_v4  ;;  %371 = vmatpush.msra.mxu0 %v2427_v4  ;;  %v2448_v17 = vand.u32 4294901760, %v337_v11  ;;  %s1851_s12 = scalar_lea.hbm %s3361_s4, %s2044_s8 }
  0x3f   : > { %v2444_v16 = vsub.f32 %v343_v2, %v2431_v6  ;;  %v2451_v18 = vsub.f32 %v341_v7, %v2433_v9  ;;  %v2456_v20 = vand.u32 4294901760, %v335_v12  ;;  %v2458_v21 = vand.u32 4294901760, %v333_v13  ;;  %s1977_s26 = sshll.u32 %s3451_s3, 3  ;;  %v331_v36 = vld [vmem:[#allocation7 + $0x70] sm:$0xff]  ;;  %v329_v37 = vld [vmem:[#allocation7 + $0x60] sm:$0xff]  ;;  %s1852_s9 = sshll.u32 %s3292_s25, 4  ;;  %s1853_s9 = int_to_ptr.vmem [resolvable:$true] %s1852_s9 }
  0x40   : > { %v2454_v19 = vsub.f32 %v339_v8, %v2435_v10  ;;  %v437_v22 = vand.u32 4294901760, %v2438_v14  ;;  %v443_v23 = vand.u32 4294901760, %v2441_v15  ;;  %550 = vmatpush.msra.mxu2 %v2438_v14  ;;  %620 = vmatpush.msra.mxu3 %v2429_v5  ;;  %v2466_v25 = vsub.f32 %v337_v11, %v2448_v17  ;;  %s2471_s20 = scalar_lea.vmem %s3358_s1, %s1977_s26  ;;  %v327_v38 = vld [vmem:[#allocation7 + $0x50] sm:$0xff]  ;;  %v325_v44 = vld [vmem:[#allocation7 + $0x40] sm:$0xff]  ;;  %s1854_s19 = sshll.u32 %s1851_s12, 4  ;;  %s1855_s19 = int_to_ptr.hbm [resolvable:$true] %s1854_s19 }
  0x41   : > { %v449_v24 = vand.u32 4294901760, %v2444_v16  ;;  %v455_v26 = vand.u32 4294901760, %v2451_v18  ;;  %373 = vmatpush.msra.mxu0 %v2429_v5  ;;  %v2477_v28 = vsub.f32 %v335_v12, %v2456_v20  ;;  %v274_v29 = vld [vmem:[%s2471_s20] sm:$0xff]  ;;  %v276_v30 = vld [vmem:[%s2471_s20 + $0x10] sm:$0xff]  ;;  %v2494_v35 = vsub.f32 %v333_v13, %v2458_v21  ;;  %v275_v52 = vld [vmem:[%s2471_s20 + $0x8] sm:$0xff]  ;;  %s1839_s13 = scalar_lea.sflag [#allocation4], %s2410_s14 }
  0x42   : > { %v461_v27 = vand.u32 4294901760, %v2454_v19  ;;  %v438_v31 = vsub.f32 %v2438_v14, %v437_v22  ;;  %v444_v32 = vsub.f32 %v2441_v15, %v443_v23  ;;  %553 = vmatpush.msra.mxu2 %v2441_v15  ;;  %622 = vmatpush.msra.mxu3 %v2431_v6  ;;  %v467_v34 = vand.u32 4294901760, %v2466_v25  ;;  %v323_v51 = vld [vmem:[#allocation7 + $0x30] sm:$0xff]  ;;  %v277_v53 = vld [vmem:[%s2471_s20 + $0x18] sm:$0xff]  ;;  %v321_v59 = vld [vmem:[#allocation7 + $0x20] sm:$0xff]  ;;  %s2210_s5 = sshra.s32 %s1855_s19, 4  ;;  %s2211_s5 = int_to_ptr.hbm [resolvable:$true] %s2210_s5 }
  0x43   : > { %v450_v33 = vsub.f32 %v2444_v16, %v449_v24  ;;  %282 = vperm.xlu0 %2119, %v274_v29   ;;  %288 = vperm.xlu1 %2120, %v276_v30   ;;  %v456_v41 = vsub.f32 %v2451_v18, %v455_v26  ;;  %v473_v43 = vand.u32 4294901760, %v2477_v28  ;;  %v2507_v46 = vand.u32 4294901760, %v331_v36  ;;  %v319_v1 = vld [vmem:[#allocation7 + $0x10] sm:$0xff]  ;;  %s2212_s30 = scalar_lea.hbm %s2211_s5, 64  ;;  %p2217_p7 = scmp.lt.s32.totalorder %s2211_s5, %s3361_s4 }
  0x44   : > { %v439_v39 = vand.u32 4294901760, %v438_v31  ;;  %v445_v40 = vand.u32 4294901760, %v444_v32  ;;  %556 = vmatpush.msra.mxu2 %v2444_v16  ;;  %624 = vmatpush.msra.mxu3 %v2433_v9  ;;  %v462_v42 = vsub.f32 %v2454_v19, %v461_v27  ;;  %v2509_v47 = vand.u32 4294901760, %v329_v37  ;;  %v355_v14 = vld [vmem:[#allocation7 + $0x130] sm:$0xff]  ;;  %p2213_p4 = scmp.ne.s32.totalorder %s2211_s5, %s2212_s30 }
  0x45   : > { %375 = vmatpush.msra.mxu0 %v2431_v6  ;;  %v451_v45 = vand.u32 4294901760, %v450_v33  ;;  %v2511_v48 = vand.u32 4294901760, %v327_v38  ;;  %v468_v49 = vsub.f32 %v2466_v25, %v467_v34  ;;  %v479_v50 = vand.u32 4294901760, %v2494_v35 }
  0x46   : > { %440 = vmatpush.msra.mxu1 %v439_v39  ;;  %559 = vmatpush.msra.mxu2 %v2451_v18  ;;  %v457_v54 = vand.u32 4294901760, %v456_v41  ;;  %v2523_v55 = vsub.f32 %v331_v36, %v2507_v46  ;;  %v2526_v56 = vsub.f32 %v329_v37, %v2509_v47  ;;  %v2528_v57 = vand.u32 4294901760, %v325_v44  ;;  %p2214_p6 = pnand %p2213_p4, %p2358_p11 }
  0x47   : > { %626 = vmatpush.msra.mxu3 %v2435_v10  ;;  %377 = vmatpush.msra.mxu0 %v2433_v9  ;;  %v474_v58 = vsub.f32 %v2477_v28, %v473_v43  ;;  %v463_v60 = vand.u32 4294901760, %v462_v42  ;;  %v2538_v62 = vsub.f32 %v327_v38, %v2511_v48  ;;  %v2540_v63 = vand.u32 4294901760, %v323_v51 }
  0x48   : > { %446 = vmatpush.msra.mxu1 %v445_v40  ;;  %562 = vmatpush.msra.mxu2 %v2454_v19  ;;  %v485_v61 = vand.u32 4294901760, %v2523_v55  ;;  %v480_v0 = vsub.f32 %v2494_v35, %v479_v50  ;;  %v469_v2 = vand.u32 4294901760, %v468_v49  ;;  %v491_v3 = vand.u32 4294901760, %v2526_v56  ;;  %p2215_p0 = pneg %p2214_p6 }
  0x49   : > { %628 = vmatpush.msra.mxu3 %v2448_v17  ;;  %379 = vmatpush.msra.mxu0 %v2435_v10  ;;  %v2548_v7 = vsub.f32 %v325_v44, %v2528_v57  ;;  %v2550_v8 = vand.u32 4294901760, %v321_v59  ;;  %v475_v11 = vand.u32 4294901760, %v474_v58  ;;  %v497_v13 = vand.u32 4294901760, %v2538_v62 }
  0x4a   : > { %452 = vmatpush.msra.mxu1 %v451_v45  ;;  %565 = vmatpush.msra.mxu2 %v2466_v25  ;;  %v486_v12 = vsub.f32 %v2523_v55, %v485_v61  ;;  %v2560_v29 = vsub.f32 %v323_v51, %v2540_v63  ;;  %v2562_v30 = vand.u32 4294901760, %v319_v1  ;;  %v481_v31 = vand.u32 4294901760, %v480_v0  ;;  %v317_v0 = vld [vmem:[#allocation7] sm:$0xff] }
  0x4b   : > { %285 = vperm.xlu0 %2119, %v275_v52   ;;  %291 = vperm.xlu1 %2120, %v277_v53   ;;  %v492_v32 = vsub.f32 %v2526_v56, %v491_v3  ;;  %v503_v33 = vand.u32 4294901760, %v2548_v7  ;;  %v2572_v36 = vsub.f32 %v321_v59, %v2550_v8  ;;  %v498_v38 = vsub.f32 %v2538_v62, %v497_v13  ;;  %v349_v25 = vld [vmem:[#allocation7 + $0x100] sm:$0xff] }
  0x4c   : > { %458 = vmatpush.msra.mxu1 %v457_v54  ;;  %568 = vmatpush.msra.mxu2 %v2477_v28  ;;  %v487_v37 = vand.u32 4294901760, %v486_v12  ;;  %v509_v39 = vand.u32 4294901760, %v2560_v29  ;;  %v2582_v40 = vsub.f32 %v319_v1, %v2562_v30  ;;  %v2616_v1 = vand.u32 4294901760, %v317_v0 }
  0x4d   : > { %630 = vmatpush.msra.mxu3 %v2456_v20  ;;  %381 = vmatpush.msra.mxu0 %v2448_v17  ;;  %v493_v41 = vand.u32 4294901760, %v492_v32  ;;  %v504_v42 = vsub.f32 %v2548_v7, %v503_v33  ;;  %v515_v44 = vand.u32 4294901760, %v2572_v36  ;;  %v499_v45 = vand.u32 4294901760, %v498_v38 }
  0x4e   : > { %464 = vmatpush.msra.mxu1 %v463_v60  ;;  %571 = vmatpush.msra.mxu2 %v2494_v35  ;;  %v510_v49 = vsub.f32 %v2560_v29, %v509_v39  ;;  %v521_v51 = vand.u32 4294901760, %v2582_v40 }
  0x4f   : > { %632 = vmatpush.msra.mxu3 %v2458_v21  ;;  %383 = vmatpush.msra.mxu0 %v2456_v20  ;;  %v505_v52 = vand.u32 4294901760, %v504_v42  ;;  %v516_v53 = vsub.f32 %v2572_v36, %v515_v44 }
  0x50   : > { %470 = vmatpush.msra.mxu1 %v469_v2  ;;  %574 = vmatpush.msra.mxu2 %v2523_v55  ;;  %v511_v54 = vand.u32 4294901760, %v510_v49  ;;  %v522_v58 = vsub.f32 %v2582_v40, %v521_v51  ;;  %v526_v2 = vsub.f32 %v317_v0, %v2616_v1 }
  0x51   : > { %634 = vmatpush.msra.mxu3 %v2507_v46  ;;  %385 = vmatpush.msra.mxu0 %v2458_v21  ;;  %v517_v59 = vand.u32 4294901760, %v516_v53 }
  0x52   : > { %476 = vmatpush.msra.mxu1 %v475_v11  ;;  %577 = vmatpush.msra.mxu2 %v2526_v56  ;;  %v523_v60 = vand.u32 4294901760, %v522_v58  ;;  %v527_v11 = vand.u32 4294901760, %v526_v2 }
  0x53   : > { %636 = vmatpush.msra.mxu3 %v2509_v47  ;;  %387 = vmatpush.msra.mxu0 %v2507_v46 }
  0x54   : > { %482 = vmatpush.msra.mxu1 %v481_v31  ;;  %580 = vmatpush.msra.mxu2 %v2538_v62  ;;  %v528_v12 = vsub.f32 %v526_v2, %v527_v11 }
  0x55   : > { %638 = vmatpush.msra.mxu3 %v2511_v48  ;;  %389 = vmatpush.msra.mxu0 %v2509_v47 }
  0x56   : > { %488 = vmatpush.msra.mxu1 %v487_v37  ;;  %583 = vmatpush.msra.mxu2 %v2548_v7  ;;  %v529_v31 = vand.u32 4294901760, %v528_v12 }
  0x57   : > { %640 = vmatpush.msra.mxu3 %v2528_v57  ;;  %391 = vmatpush.msra.mxu0 %v2511_v48 }
  0x58   : > { %494 = vmatpush.msra.mxu1 %v493_v41  ;;  %586 = vmatpush.msra.mxu2 %v2560_v29 }
  0x59   : > { %642 = vmatpush.msra.mxu3 %v2540_v63  ;;  %393 = vmatpush.msra.mxu0 %v2528_v57 }
  0x5a   : > { %500 = vmatpush.msra.mxu1 %v499_v45  ;;  %589 = vmatpush.msra.mxu2 %v2572_v36 }
  0x5b   : > { %644 = vmatpush.msra.mxu3 %v2550_v8  ;;  %395 = vmatpush.msra.mxu0 %v2540_v63 }
  0x5c   : > { %506 = vmatpush.msra.mxu1 %v505_v52  ;;  %592 = vmatpush.msra.mxu2 %v2582_v40 }
  0x5d   : > { %646 = vmatpush.msra.mxu3 %v2562_v30  ;;  %397 = vmatpush.msra.mxu0 %v2550_v8 }
  0x5e   : > { %512 = vmatpush.msra.mxu1 %v511_v54  ;;  %595 = vmatpush.msra.mxu2 %v526_v2  ;;  %v348_v2 = vld [vmem:[#allocation7 + $0xf8] sm:$0xff] }
  0x5f   : > { %399 = vmatpush.msra.mxu0 %v2562_v30  ;;  %648 = vmatpush.msra.mxu3 %v2616_v1  ;;  %v2795_v12 = vand.u32 4294901760, %v348_v2 }
  0x60   : > { %518 = vmatpush.msra.mxu1 %v517_v59 }
  0x61   : > { %401 = vmatpush.msra.mxu0 %v2616_v1 }
  0x62   : > { %524 = vmatpush.msra.mxu1 %v523_v60 }
  0x63   : > { %677 = vmatpush.msrb.mxu0 %v437_v22 }
  0x64   : > { %530 = vmatpush.msra.mxu1 %v529_v31 }
  0x65   : > { %681 = vmatpush.msrb.mxu0 %v443_v23  ;;  %v278_v23 = vlaneseq }
  0x66   : > { %756 = vmatpush.msrb.mxu1 %v2427_v4  ;;  %v2644_v4 = vand.u32 4294901760, %v355_v14 }
  0x67   : > { %685 = vmatpush.msrb.mxu0 %v449_v24 }
  0x68   : > { %758 = vmatpush.msrb.mxu1 %v2429_v5  ;;  %817 = vmatpush.msrb.mxu2 %v2644_v4  ;;  %v2651_v5 = vsub.f32 %v355_v14, %v2644_v4  ;;  %v346_v14 = vld [vmem:[#allocation7 + $0xe8] sm:$0xff] }
  0x69   : > { %689 = vmatpush.msrb.mxu0 %v455_v26  ;;  %v822_v26 = vand.u32 4294901760, %v349_v25 }
  0x6a   : > { %760 = vmatpush.msrb.mxu1 %v2431_v6  ;;  %v871_v6 = vand.u32 4294901760, %v2651_v5 }
  0x6b   : > { %693 = vmatpush.msrb.mxu0 %v461_v27  ;;  %v888_v28 = vsub.f32 %v349_v25, %v822_v26 }
  0x6c   : > { %762 = vmatpush.msrb.mxu1 %v2433_v9  ;;  %v353_v9 = vld [vmem:[#allocation7 + $0x120] sm:$0xff]  ;;  %v872_v15 = vsub.f32 %v2651_v5, %v871_v6 }
  0x6d   : > { %697 = vmatpush.msrb.mxu0 %v467_v34  ;;  %v279_v34 = vand.u32 127, %v278_v23 }
  0x6e   : > { %764 = vmatpush.msrb.mxu1 %v2435_v10  ;;  %v2658_v10 = vand.u32 4294901760, %v353_v9  ;;  %v873_v16 = vand.u32 4294901760, %v872_v15 }
  0x6f   : > { %701 = vmatpush.msrb.mxu0 %v473_v43  ;;  %v2718_v32 = vadd.s32 128, %v279_v34 }
  0x70   : > { %766 = vmatpush.msrb.mxu1 %v2448_v17  ;;  %819 = vmatpush.msrb.mxu2 %v2658_v10  ;;  %v2666_v17 = vsub.f32 %v353_v9, %v2658_v10 }
  0x71   : > { %705 = vmatpush.msrb.mxu0 %v479_v50  ;;  %874 = vmatpush.msrb.mxu3 %v873_v16  ;;  %v2278_v50 = vmov 0.0  }
  0x72   : > { %768 = vmatpush.msrb.mxu1 %v2456_v20  ;;  %v877_v18 = vand.u32 4294901760, %v2666_v17  ;;  %v351_v20 = vld [vmem:[#allocation7 + $0x110] sm:$0xff] }
  0x73   : > { %709 = vmatpush.msrb.mxu0 %v485_v61 }
  0x74   : > { %770 = vmatpush.msrb.mxu1 %v2458_v21  ;;  %v878_v19 = vsub.f32 %v2666_v17, %v877_v18  ;;  %v820_v21 = vand.u32 4294901760, %v351_v20 }
  0x75   : > { %713 = vmatpush.msrb.mxu0 %v491_v3 }
  0x76   : > { %772 = vmatpush.msrb.mxu1 %v2507_v46  ;;  %v879_v22 = vand.u32 4294901760, %v878_v19  ;;  %821 = vmatpush.msrb.mxu2 %v820_v21  ;;  %v882_v24 = vsub.f32 %v351_v20, %v820_v21  ;;  %v889_v46 = vand.u32 4294901760, %v888_v28  ;;  %v342_v20 = vld [vmem:[#allocation7 + $0xc8] sm:$0xff] }
  0x77   : > { %717 = vmatpush.msrb.mxu0 %v497_v13 }
  0x78   : > { %774 = vmatpush.msrb.mxu1 %v2509_v47  ;;  %880 = vmatpush.msrb.mxu3 %v879_v22  ;;  %v883_v27 = vand.u32 4294901760, %v882_v24  ;;  %v890_v62 = vsub.f32 %v888_v28, %v889_v46 }
  0x79   : > { %721 = vmatpush.msrb.mxu0 %v503_v33  ;;  %823 = vmatpush.msrb.mxu2 %v822_v26 }
  0x7a   : > { %776 = vmatpush.msrb.mxu1 %v2511_v48  ;;  %v884_v35 = vsub.f32 %v882_v24, %v883_v27  ;;  %v3372_v48 = vmov 1.0   ;;  %v891_v3 = vand.u32 4294901760, %v890_v62 }
  0x7b   : > { %725 = vmatpush.msrb.mxu0 %v509_v39 }
  0x7c   : > { %778 = vmatpush.msrb.mxu1 %v2528_v57  ;;  %v885_v61 = vand.u32 4294901760, %v884_v35 }
  0x7d   : > { %729 = vmatpush.msrb.mxu0 %v515_v44 }
  0x7e   : > { %780 = vmatpush.msrb.mxu1 %v2540_v63  ;;  %886 = vmatpush.msrb.mxu3 %v885_v61 }
  0x7f   : > { %733 = vmatpush.msrb.mxu0 %v521_v51 }
  0x80   : > { %782 = vmatpush.msrb.mxu1 %v2550_v8  ;;  %892 = vmatpush.msrb.mxu3 %v891_v3 }
  0x81   : > { %737 = vmatpush.msrb.mxu0 %v527_v11 }
  0x82   : > { %784 = vmatpush.msrb.mxu1 %v2562_v30 }
  0x84   : > { %786 = vmatpush.msrb.mxu1 %v2616_v1 }
  0xb5   : > { %v283_v43 = vpop.permute.xlu0 %282  ;;  %v2693_v56 = vpop.permute.xlu1 %288 }
  0xb6   : > { %vm2683_vm0 = vcmp.eq.s32.totalorder %v283_v43, %v279_v34  ;;  %vm2704_vm1 = vcmp.eq.s32.totalorder %v2693_v56, %v279_v34  ;;  %vm294_vm3 = vcmp.eq.s32.totalorder %v283_v43, %v2718_v32  ;;  %vm298_vm7 = vcmp.eq.s32.totalorder %v2693_v56, %v2718_v32  ;;  %v338_v56 = vld [vmem:[#allocation7 + $0xa8] sm:$0xff] }
  0xb7   : > { %1986 = vmatmul.msk.f32.vlgmr.msra.gmra.mxu1 %vm2683_vm0, %v3372_v48  ;;  %v1978_v55 = vsel %vm2683_vm0, 1.0, %v2278_v50  ;;  %v1982_v36 = vsel %vm2704_vm1, 1.0, %v2278_v50  ;;  %v2753_v44 = vsel %vm294_vm3, 1.0, %v2278_v50  ;;  %v2813_v15 = vsel %vm298_vm7, 1.0, %v2278_v50 }
  0xb8   : > { %v2695_v57 = vsub.f32 %v1978_v55, %v1978_v55  ;;  %968 = vmatpush.msra.mxu1 %v2644_v4  ;;  %v2740_v40 = vsub.f32 %v1982_v36, %v1982_v36  ;;  %v359_v52 = vsel %vm357_vm5, %v2753_v44, 0 }
  0xb9   : > { %v2776_v58 = vsub.f32 %v359_v52, %v359_v52 }
  0xba   : > { %598 = vmatmul.f32.vlgmr.msra.gmra.mxu2 %v2695_v57  ;;  %v2700_v63 = vand.u32 4294901760, %v2695_v57  ;;  %970 = vmatpush.msra.mxu1 %v2658_v10  ;;  %3404 = vst [vmem:[#allocation15_spill] sm:$0xff] %v2740_v40  ;;  %v2758_v49 = vand.u32 4294901760, %v2740_v40 }
  0xbb   : > { %1015 = vmatpush.msra.mxu2 %v871_v6  ;;  %v2791_v1 = vand.u32 4294901760, %v2776_v58 }
  0xbc   : > { %652 = vmatmul.f32.vlgmr.msra.gmra.mxu3 %v2700_v63  ;;  %v405_v8 = vsub.f32 %v2695_v57, %v2700_v63  ;;  %972 = vmatpush.msra.mxu1 %v820_v21  ;;  %3408 = vst [vmem:[#allocation17_spill] sm:$0xff] %v2758_v49  ;;  %v421_v53 = vsub.f32 %v2740_v40, %v2758_v49 }
  0xbd   : > { %v286_v13 = vpop.permute.xlu0 %285  ;;  %1019 = vmatpush.msra.mxu2 %v877_v18  ;;  %1058 = vmatpush.msra.mxu3 %v2644_v4  ;;  %v2733_v38 = vpop.permute.xlu1 %291  ;;  %v2803_v4 = vsub.f32 %v348_v2, %v2795_v12  ;;  %v827_v6 = vsub.f32 %v2776_v58, %v2791_v1  ;;  %v334_v2 = vld [vmem:[#allocation7 + $0x88] sm:$0xff] }
  0xbe   : > { %vm2711_vm2 = vcmp.eq.s32.totalorder %v286_v13, %v279_v34  ;;  %v2715_v30 = vand.u32 4294901760, %v405_v8  ;;  %974 = vmatpush.msra.mxu1 %v822_v26  ;;  %vm2745_vm4 = vcmp.eq.s32.totalorder %v2733_v38, %v279_v34  ;;  %vm296_vm6 = vcmp.eq.s32.totalorder %v286_v13, %v2718_v32 }
  0xbf   : > { %1987 = vmatmul.msk.f32.gmra.mxu1 %vm2711_vm2, %v3372_v48  ;;  %v1980_v33 = vsel %vm2711_vm2, 1.0, %v2278_v50  ;;  %1023 = vmatpush.msra.mxu2 %v883_v27  ;;  %v1984_v51 = vsel %vm2745_vm4, 1.0, %v2278_v50  ;;  %v2779_v59 = vsel %vm296_vm6, 1.0, %v2278_v50  ;;  %v2781_v60 = vand.u32 4294901760, %v421_v53 }
  0xc0   : > { %407 = vmatmul.f32.vlgmr.msra.gmra.mxu0 %v2715_v30  ;;  %v2730_v37 = vsub.f32 %v1980_v33, %v1980_v33  ;;  %1060 = vmatpush.msra.mxu3 %v2658_v10  ;;  %v2772_v54 = vsub.f32 %v1984_v51, %v1984_v51  ;;  %v362_v11 = vsel %vm357_vm5, %v2779_v59, 0  ;;  %v344_v10 = vld [vmem:[#allocation7 + $0xd8] sm:$0xff]  ;;  %v3369_v16 = vand.u32 4294901760, %v2803_v4 }
  0xc1   : > { %924 = vmatpush.msra.mxu0 %v2651_v5  ;;  %1027 = vmatpush.msra.mxu2 %v889_v46  ;;  %3410 = vst [vmem:[#allocation19_spill] sm:$0xff] %v2781_v60  ;;  %v2805_v5 = vand.u32 4294901760, %v346_v14  ;;  %v2810_v9 = vsub.f32 %v362_v11, %v362_v11  ;;  %v2819_v18 = vand.u32 4294901760, %v344_v10  ;;  %vm300_vm8 = vcmp.eq.s32.totalorder %v2733_v38, %v2718_v32  ;;  %v336_v51 = vld [vmem:[#allocation7 + $0x98] sm:$0xff] }
  0xc2   : > { %603 = vmatmul.f32.gmra.mxu2 %v2730_v37  ;;  %v2738_v39 = vand.u32 4294901760, %v2730_v37  ;;  %1062 = vmatpush.msra.mxu3 %v820_v21  ;;  %3409 = vst [vmem:[#allocation18_spill] sm:$0xff] %v2772_v54  ;;  %v2784_v0 = vand.u32 4294901760, %v2772_v54  ;;  %v1150_v21 = vsub.f32 %v2803_v4, %v3369_v16  ;;  %v2838_v25 = vand.u32 4294901760, %v827_v6  ;;  %v324_v16 = vld [vmem:[#allocation7 + $0x38] sm:$0xff] }
  0xc3   : > { %927 = vmatpush.msra.mxu0 %v2666_v17  ;;  %v2817_v17 = vsub.f32 %v346_v14, %v2805_v5  ;;  %v2831_v23 = vsub.f32 %v344_v10, %v2819_v18  ;;  %v365_v27 = vsel %vm357_vm5, %v2813_v15, 0  ;;  %v2860_v8 = vand.u32 4294901760, %v338_v56 }
  0xc4   : > { %658 = vmatmul.f32.gmra.mxu3 %v2738_v39  ;;  %v413_v42 = vsub.f32 %v2730_v37, %v2738_v39  ;;  %3411 = vst [vmem:[#allocation20_spill] sm:$0xff] %v2784_v0  ;;  %v429_v31 = vsub.f32 %v2772_v54, %v2784_v0  ;;  %v1151_v34 = vand.u32 4294901760, %v1150_v21  ;;  %v2866_v13 = vsel %vm300_vm8, 1.0, %v2278_v50 }
  0xc5   : > { %930 = vmatpush.msra.mxu0 %v882_v24  ;;  %1064 = vmatpush.msra.mxu3 %v822_v26  ;;  %v3368_v22 = vand.u32 4294901760, %v2817_v17  ;;  %v2833_v24 = vand.u32 4294901760, %v342_v20  ;;  %3413 = vst [vmem:[#allocation22_spill] sm:$0xff] %v2838_v25  ;;  %v2841_v26 = vand.u32 4294901760, %v2810_v9  ;;  %v3367_v43 = vand.u32 4294901760, %v2831_v23 }
  0xc6   : > { %v2755_v45 = vand.u32 4294901760, %v413_v42  ;;  %v2821_v19 = vand.u32 4294901760, %v429_v31  ;;  %v2872_v36 = vsub.f32 %v365_v27, %v365_v27  ;;  %v2882_v32 = vsub.f32 %v338_v56, %v2860_v8 }
  0xc7   : > { %1988 = vmatmul.msk.f32.gmra.mxu1 %vm2704_vm1, %v3372_v48  ;;  %933 = vmatpush.msra.mxu0 %v888_v28  ;;  %v340_v28 = vld [vmem:[#allocation7 + $0xb8] sm:$0xff]  ;;  %v1156_v35 = vsub.f32 %v2817_v17, %v3368_v22  ;;  %v2850_v46 = vsub.f32 %v342_v20, %v2833_v24  ;;  %v1162_v62 = vsub.f32 %v2831_v23, %v3367_v43  ;;  %v2884_v38 = vand.u32 4294901760, %v336_v51 }
  0xc8   : > { %3407 = vst [vmem:[#allocation16_spill] sm:$0xff] %v2755_v45  ;;  %415 = vmatmul.f32.gmra.mxu0 %v2755_v45  ;;  %v2853_v55 = vand.u32 4294901760, %v340_v28  ;;  %v835_v33 = vsub.f32 %v2810_v9, %v2841_v26  ;;  %v3362_v31 = vand.u32 4294901760, %v2882_v32  ;;  %v2896_v6 = vand.u32 4294901760, %v334_v2 }
  0xc9   : > { %3412 = vst [vmem:[#allocation21_spill] sm:$0xff] %v2821_v19  ;;  %v1157_v61 = vand.u32 4294901760, %v1156_v35  ;;  %v3365_v3 = vand.u32 4294901760, %v2850_v46  ;;  %v1163_v52 = vand.u32 4294901760, %v1162_v62  ;;  %v2894_v14 = vsub.f32 %v336_v51, %v2884_v38 }
  0xca   : > { %608 = vmatmul.f32.gmra.mxu2 %v2740_v40  ;;  %v2875_v42 = vsub.f32 %v340_v28, %v2853_v55  ;;  %v2901_v10 = vand.u32 4294901760, %v835_v33  ;;  %v2904_v20 = vand.u32 4294901760, %v2872_v36  ;;  %v368_v21 = vsel %vm357_vm5, %v2866_v13, 0  ;;  %v332_v28 = vld [vmem:[#allocation7 + $0x78] sm:$0xff]  ;;  %v330_v33 = vld [vmem:[#allocation7 + $0x68] sm:$0xff] }
  0xcb   : > { %v1168_v50 = vsub.f32 %v2850_v46, %v3365_v3  ;;  %v3363_v35 = vand.u32 4294901760, %v2894_v14  ;;  %v2918_v56 = vsub.f32 %v334_v2, %v2896_v6 }
  0xcc   : > { %664 = vmatmul.f32.gmra.mxu3 %v2758_v49  ;;  %v3364_v53 = vand.u32 4294901760, %v2875_v42  ;;  %3414 = vst [vmem:[#allocation23_spill] sm:$0xff] %v2901_v10 }
  0xcd   : > { %v1169_v11 = vand.u32 4294901760, %v1168_v50  ;;  %v3366_v50 = vand.u32 4294901760, %v2918_v56 }
  0xce   : > { %v1174_v27 = vsub.f32 %v2875_v42, %v3364_v53 }
  0xcf   : > { %1989 = vmatmul.msk.f32.gmra.mxu1 %vm2745_vm4, %v3372_v48 }
  0xd0   : > { %423 = vmatmul.f32.gmra.mxu0 %v2781_v60  ;;  %v1175_v62 = vand.u32 4294901760, %v1174_v27  ;;  %v2936_v27 = vsub.f32 %v368_v21, %v368_v21  ;;  %v3416_v60 = vmov 1.0  }
  0xd2   : > { %613 = vmatmul.f32.gmra.mxu2 %v2772_v54  ;;  %v2970_v22 = vand.u32 4294901760, %v2936_v27 }
  0xd4   : > { %670 = vmatmul.f32.gmra.mxu3 %v2784_v0 }
  0xd7   : > { %1994 = vmatmul.msk.f32.vlgmr.msrb.gmra.mxu1 %vm2683_vm0, %v3372_v48 }
  0xd8   : > { %431 = vmatmul.f32.gmra.mxu0 %v2821_v19  ;;  %1152 = vmatpush.msrb.mxu1 %v1151_v34  ;;  %v1180_v34 = vsub.f32 %v2882_v32, %v3362_v31  ;;  %v2938_v31 = vand.u32 4294901760, %v330_v33  ;;  %v320_v19 = vld [vmem:[#allocation7 + $0x18] sm:$0xff] }
  0xd9   : > { %v3011_v54 = vand.u32 4294901760, %v320_v19 }
  0xda   : > { %829 = vmatmul.f32.vlgmr.msrb.gmra.mxu2 %v2838_v25  ;;  %1158 = vmatpush.msrb.mxu1 %v1157_v61  ;;  %v2920_v61 = vand.u32 4294901760, %v332_v28  ;;  %v1181_v51 = vand.u32 4294901760, %v1180_v34  ;;  %v328_v34 = vld [vmem:[#allocation7 + $0x58] sm:$0xff]  ;;  %v2950_v21 = vsub.f32 %v330_v33, %v2938_v31 }
  0xdb   : > { %1262 = vmatpush.msrb.mxu2 %v2803_v4  ;;  %v2946_v3 = vand.u32 4294901760, %v328_v34  ;;  %v3029_v45 = vsub.f32 %v320_v19, %v3011_v54 }
  0xdc   : > { %1998 = vmatmul.msk.f32.vlgmr.msrb.gmra.mxu3 %vm357_vm5, %v2753_v44  ;;  %1164 = vmatpush.msrb.mxu1 %v1163_v52  ;;  %v1186_v52 = vsub.f32 %v2894_v14, %v3363_v35  ;;  %v2930_v2 = vsub.f32 %v332_v28, %v2920_v61  ;;  %v1192_v28 = vsub.f32 %v2918_v56, %v3366_v50 }
  0xdd   : > { %1265 = vmatpush.msrb.mxu2 %v2817_v17  ;;  %1330 = vmatpush.msrb.mxu3 %v2795_v12  ;;  %v2960_v43 = vsub.f32 %v328_v34, %v2946_v3 }
  0xde   : > { %1170 = vmatpush.msrb.mxu1 %v1169_v11  ;;  %v843_v11 = vsub.f32 %v2872_v36, %v2904_v20  ;;  %v1187_v35 = vand.u32 4294901760, %v1186_v52  ;;  %v3370_v53 = vand.u32 4294901760, %v2930_v2  ;;  %v1193_v52 = vand.u32 4294901760, %v1192_v28 }
  0xdf   : > { %1995 = vmatmul.msk.f32.gmra.mxu1 %vm2711_vm2, %v3372_v48  ;;  %1268 = vmatpush.msrb.mxu2 %v2831_v23  ;;  %v3376_v28 = vand.u32 4294901760, %v2950_v21 }
  0xe0   : > { %1990 = vmatmul.msk.f32.vlgmr.msrb.gmra.mxu0 %vm2683_vm0, %v3372_v48  ;;  %1332 = vmatpush.msrb.mxu3 %v2805_v5  ;;  %v1198_v50 = vsub.f32 %v2930_v2, %v3370_v53  ;;  %v2967_v33 = vand.u32 4294901760, %v843_v11  ;;  %v3378_v53 = vand.u32 4294901760, %v2960_v43  ;;  %v322_v11 = vld [vmem:[#allocation7 + $0x28] sm:$0xff] }
  0xe1   : > { %1083 = vmatpush.msrb.mxu0 %v2795_v12  ;;  %1271 = vmatpush.msrb.mxu2 %v2850_v46 }
  0xe2   : > { %837 = vmatmul.f32.gmra.mxu2 %v2901_v10  ;;  %1334 = vmatpush.msrb.mxu3 %v2819_v18  ;;  %3415 = vst [vmem:[#allocation24_spill] sm:$0xff] %v2967_v33  ;;  %v1199_v34 = vand.u32 4294901760, %v1198_v50  ;;  %v1210_v50 = vsub.f32 %v2960_v43, %v3378_v53 }
  0xe3   : > { %1176 = vmatpush.msrb.mxu1 %v1175_v62  ;;  %1085 = vmatpush.msrb.mxu0 %v2805_v5  ;;  %v326_v62 = vld [vmem:[#allocation7 + $0x48] sm:$0xff] }
  0xe4   : > { %1999 = vmatmul.msk.f32.gmra.mxu3 %vm357_vm5, %v2779_v59  ;;  %1274 = vmatpush.msrb.mxu2 %v2875_v42 }
  0xe5   : > { %1182 = vmatpush.msrb.mxu1 %v1181_v51  ;;  %1336 = vmatpush.msrb.mxu3 %v2833_v24  ;;  %v2962_v51 = vand.u32 4294901760, %v326_v62 }
  0xe6   : > { %1087 = vmatpush.msrb.mxu0 %v2819_v18  ;;  %1277 = vmatpush.msrb.mxu2 %v2882_v32 }
  0xe7   : > { %1996 = vmatmul.msk.f32.gmra.mxu1 %vm2704_vm1, %v3372_v48  ;;  %1338 = vmatpush.msrb.mxu3 %v2853_v55  ;;  %v2977_v10 = vsub.f32 %v326_v62, %v2962_v51 }
  0xe8   : > { %1991 = vmatmul.msk.f32.gmra.mxu0 %vm2711_vm2, %v3372_v48  ;;  %1188 = vmatpush.msrb.mxu1 %v1187_v35  ;;  %v2979_v48 = vand.u32 4294901760, %v324_v16  ;;  %v1204_v35 = vsub.f32 %v2950_v21, %v3376_v28  ;;  %v851_v28 = vsub.f32 %v2936_v27, %v2970_v22 }
  0xe9   : > { %1089 = vmatpush.msrb.mxu0 %v2833_v24  ;;  %1280 = vmatpush.msrb.mxu2 %v2894_v14  ;;  %v3382_v62 = vand.u32 4294901760, %v2977_v10 }
  0xea   : > { %845 = vmatmul.f32.gmra.mxu2 %v2967_v33  ;;  %1194 = vmatpush.msrb.mxu1 %v1193_v52  ;;  %v2992_v25 = vsub.f32 %v324_v16, %v2979_v48  ;;  %v2994_v33 = vand.u32 4294901760, %v322_v11  ;;  %v1205_v52 = vand.u32 4294901760, %v1204_v35  ;;  %v318_v35 = vld [vmem:[#allocation7 + $0x8] sm:$0xff] }
  0xeb   : > { %1091 = vmatpush.msrb.mxu0 %v2853_v55  ;;  %1340 = vmatpush.msrb.mxu3 %v2860_v8  ;;  %v1216_v16 = vsub.f32 %v2977_v10, %v3382_v62  ;;  %v3018_v53 = vand.u32 4294901760, %v318_v35 }
  0xec   : > { %2000 = vmatmul.msk.f32.gmra.mxu3 %vm357_vm5, %v2813_v15  ;;  %1200 = vmatpush.msrb.mxu1 %v1199_v34  ;;  %v3007_v0 = vsub.f32 %v322_v11, %v2994_v33  ;;  %v1211_v34 = vand.u32 4294901760, %v1210_v50  ;;  %v3023_v11 = vand.u32 4294901760, %v851_v28  ;;  %v3417_v49 = vand.u32 4294901760, %v2992_v25 }
  0xed   : > { %1283 = vmatpush.msrb.mxu2 %v2918_v56  ;;  %1093 = vmatpush.msrb.mxu0 %v2860_v8  ;;  %v1217_v50 = vand.u32 4294901760, %v1216_v16  ;;  %v3034_v62 = vsub.f32 %v318_v35, %v3018_v53  ;;  %v1233_v28 = vand.u32 4294901760, %v3029_v45 }
  0xee   : > { %1342 = vmatpush.msrb.mxu3 %v2884_v38  ;;  %1206 = vmatpush.msrb.mxu1 %v1205_v52  ;;  %v1222_v40 = vsub.f32 %v2992_v25, %v3417_v49  ;;  %v3418_v49 = vand.u32 4294901760, %v3007_v0 }
  0xef   : > { %1997 = vmatmul.msk.f32.gmra.mxu1 %vm2745_vm4, %v3416_v60  ;;  %1286 = vmatpush.msrb.mxu2 %v2930_v2  ;;  %v3386_v16 = vand.u32 4294901760, %v3034_v62  ;;  %v1234_v35 = vsub.f32 %v3029_v45, %v1233_v28 }
  0xf0   : > { %1992 = vmatmul.msk.f32.gmra.mxu0 %vm2704_vm1, %v3416_v60  ;;  %1344 = vmatpush.msrb.mxu3 %v2896_v6  ;;  %v1228_v19 = vsub.f32 %v3007_v0, %v3418_v49  ;;  %v1223_v52 = vand.u32 4294901760, %v1222_v40 }
  0xf1   : > { %1095 = vmatpush.msrb.mxu0 %v2884_v38  ;;  %1212 = vmatpush.msrb.mxu1 %v1211_v34  ;;  %v1240_v40 = vsub.f32 %v3034_v62, %v3386_v16 }
  0xf2   : > { %853 = vmatmul.f32.gmra.mxu2 %v3023_v11  ;;  %1346 = vmatpush.msrb.mxu3 %v2920_v61  ;;  %v1229_v34 = vand.u32 4294901760, %v1228_v19  ;;  %v356_v19 = vld [vmem:[#allocation7 + $0x138] sm:$0xff] }
  0xf3   : > { %1289 = vmatpush.msrb.mxu2 %v2950_v21  ;;  %1097 = vmatpush.msrb.mxu0 %v2896_v6  ;;  %v1241_v49 = vand.u32 4294901760, %v1240_v40 }
  0xf4   : > { %2001 = vmatmul.msk.f32.gmra.mxu3 %vm357_vm5, %v2866_v13  ;;  %1218 = vmatpush.msrb.mxu1 %v1217_v50  ;;  %v1235_v50 = vand.u32 4294901760, %v1234_v35 }
  0xf5   : > { %1292 = vmatpush.msrb.mxu2 %v2960_v43  ;;  %1099 = vmatpush.msrb.mxu0 %v2920_v61 }
  0xf6   : > { %1348 = vmatpush.msrb.mxu3 %v2938_v31  ;;  %1224 = vmatpush.msrb.mxu1 %v1223_v52  ;;  %v3071_v52 = vand.u32 4294901760, %v356_v19 }
  0xf7   : > { %978 = vmatmul.f32.vlgmr.msra.gmra.mxu1 %v2791_v1  ;;  %1295 = vmatpush.msrb.mxu2 %v2977_v10 }
  0xf8   : > { %1993 = vmatmul.msk.f32.gmra.mxu0 %vm2745_vm4, %v3416_v60  ;;  %1350 = vmatpush.msrb.mxu3 %v2946_v3  ;;  %v3078_v35 = vsub.f32 %v356_v19, %v3071_v52 }
  0xf9   : > { %1101 = vmatpush.msrb.mxu0 %v2938_v31  ;;  %1230 = vmatpush.msrb.mxu1 %v1229_v34 }
  0xfa   : > { %2002 = vmatmul.msk.f32.vlgmr.msra.gmra.mxu2 %vm357_vm5, %v2753_v44  ;;  %1352 = vmatpush.msrb.mxu3 %v2962_v51  ;;  %v1583_v34 = vand.u32 4294901760, %v3078_v35 }
  0xfb   : > { %1298 = vmatpush.msrb.mxu2 %v2992_v25  ;;  %1103 = vmatpush.msrb.mxu0 %v2946_v3 }
  0xfc   : > { %2006 = vmatmul.msk.f32.vlgmr.msra.gmra.mxu3 %vm357_vm5, %v2753_v44  ;;  %1236 = vmatpush.msrb.mxu1 %v1235_v50  ;;  %v1584_v40 = vsub.f32 %v3078_v35, %v1583_v34  ;;  %v354_v50 = vld [vmem:[#allocation7 + $0x128] sm:$0xff] }
  0xfd   : > { %1301 = vmatpush.msrb.mxu2 %v3007_v0  ;;  %1105 = vmatpush.msrb.mxu0 %v2962_v51  ;;  %v3097_v19 = vand.u32 4294901760, %v354_v50 }
  0xfe   : > { %1354 = vmatpush.msrb.mxu3 %v2979_v48  ;;  %1242 = vmatpush.msrb.mxu1 %v1241_v49  ;;  %v1585_v49 = vand.u32 4294901760, %v1584_v40  ;;  %v3419_v40 = vand.u32 4294901760, %v2803_v4  ;;  %v3421_v4 = vand.u32 4294901760, %v2831_v23  ;;  %v3423_v23 = vand.u32 4294901760, %v2875_v42 }
  0xff   : > { %984 = vmatmul.f32.gmra.mxu1 %v2841_v26  ;;  %1304 = vmatpush.msrb.mxu2 %v3029_v45  ;;  %v3437_v45 = vld [vmem:[#allocation19_spill] sm:$0xff] }
 0x100   : > { %936 = vmatmul.f32.vlgmr.msra.gmra.mxu0 %v2776_v58  ;;  %1356 = vmatpush.msrb.mxu3 %v2994_v33 }
 0x101   : > { %1107 = vmatpush.msrb.mxu0 %v2979_v48  ;;  %1468 = vmatpush.msra.mxu1 %v2795_v12  ;;  %v3106_v12 = vsub.f32 %v354_v50, %v3097_v19  ;;  %v352_v50 = vld [vmem:[#allocation7 + $0x118] sm:$0xff] }
 0x102   : > { %2003 = vmatmul.msk.f32.gmra.mxu2 %vm357_vm5, %v2779_v59  ;;  %1358 = vmatpush.msrb.mxu3 %v3011_v54  ;;  %v3122_v16 = vand.u32 4294901760, %v352_v50 }
 0x103   : > { %1307 = vmatpush.msrb.mxu2 %v3034_v62  ;;  %1109 = vmatpush.msrb.mxu0 %v2994_v33 }
 0x104   : > { %2007 = vmatmul.msk.f32.gmra.mxu3 %vm357_vm5, %v2779_v59  ;;  %1470 = vmatpush.msra.mxu1 %v2805_v5  ;;  %v1589_v5 = vand.u32 4294901760, %v3106_v12 }
 0x105   : > { %1111 = vmatpush.msrb.mxu0 %v3011_v54  ;;  %1529 = vmatpush.msra.mxu2 %v3071_v52 }
 0x106   : > { %1360 = vmatpush.msrb.mxu3 %v3018_v53  ;;  %1472 = vmatpush.msra.mxu1 %v2819_v18  ;;  %v1590_v18 = vsub.f32 %v3106_v12, %v1589_v5 }
 0x107   : > { %990 = vmatmul.f32.gmra.mxu1 %v2904_v20  ;;  %1113 = vmatpush.msrb.mxu0 %v3018_v53 }
 0x108   : > { %941 = vmatmul.f32.gmra.mxu0 %v2810_v9  ;;  %1586 = vmatpush.msra.mxu3 %v1585_v49  ;;  %v3420_v49 = vand.u32 4294901760, %v2817_v17  ;;  %v3422_v17 = vand.u32 4294901760, %v2850_v46 }
 0x109   : > { %1474 = vmatpush.msra.mxu1 %v2833_v24  ;;  %1389 = vmatpush.msra.mxu0 %v3419_v40  ;;  %v1591_v24 = vand.u32 4294901760, %v1590_v18  ;;  %v3424_v18 = vand.u32 4294901760, %v2882_v32  ;;  %v3426_v32 = vand.u32 4294901760, %v2918_v56  ;;  %v3441_v56 = vld [vmem:[#allocation22_spill] sm:$0xff] }
 0x10a   : > { %2004 = vmatmul.msk.f32.gmra.mxu2 %vm357_vm5, %v2813_v15 }
 0x10b   : > { %1531 = vmatpush.msra.mxu2 %v3097_v19  ;;  %1476 = vmatpush.msra.mxu1 %v2853_v55  ;;  %v3131_v55 = vsub.f32 %v352_v50, %v3122_v16  ;;  %v3425_v50 = vand.u32 4294901760, %v2894_v14  ;;  %v3428_v14 = vand.u32 4294901760, %v2950_v21 }
 0x10c   : > { %2008 = vmatmul.msk.f32.gmra.mxu3 %vm357_vm5, %v2813_v15  ;;  %1393 = vmatpush.msra.mxu0 %v3420_v49  ;;  %v3427_v49 = vand.u32 4294901760, %v2930_v2 }
 0x10d   : > { %1478 = vmatpush.msra.mxu1 %v2860_v8  ;;  %1592 = vmatpush.msra.mxu3 %v1591_v24  ;;  %v1595_v8 = vand.u32 4294901760, %v3131_v55 }
 0x10e   : > { %1397 = vmatpush.msra.mxu0 %v3421_v4  ;;  %1533 = vmatpush.msra.mxu2 %v3122_v16 }
 0x10f   : > { %996 = vmatmul.f32.gmra.mxu1 %v2970_v22  ;;  %v1596_v46 = vsub.f32 %v3131_v55, %v1595_v8 }
 0x110   : > { %946 = vmatmul.f32.gmra.mxu0 %v2872_v36  ;;  %1480 = vmatpush.msra.mxu1 %v2884_v38  ;;  %v350_v38 = vld [vmem:[#allocation7 + $0x108] sm:$0xff] }
 0x111   : > { %1401 = vmatpush.msra.mxu0 %v3422_v17  ;;  %v1534_v40 = vand.u32 4294901760, %v350_v38 }
 0x112   : > { %2005 = vmatmul.msk.f32.gmra.mxu2 %vm357_vm5, %v2866_v13  ;;  %1482 = vmatpush.msra.mxu1 %v2896_v6  ;;  %v1597_v6 = vand.u32 4294901760, %v1596_v46 }
 0x113   : > { %1405 = vmatpush.msra.mxu0 %v3423_v23  ;;  %1535 = vmatpush.msra.mxu2 %v1534_v40  ;;  %v1600_v42 = vsub.f32 %v350_v38, %v1534_v40 }
 0x114   : > { %2009 = vmatmul.msk.f32.gmra.mxu3 %vm357_vm5, %v2866_v13  ;;  %1484 = vmatpush.msra.mxu1 %v2920_v61 }
 0x115   : > { %1409 = vmatpush.msra.mxu0 %v3424_v18  ;;  %v1601_v61 = vand.u32 4294901760, %v1600_v42  ;;  %1598 = vmatpush.msra.mxu3 %v1597_v6 }
 0x116   : > { %1486 = vmatpush.msra.mxu1 %v2938_v31 }
 0x117   : > { %2010 = vmatmul.msk.f32.vlgmr.msrb.gmra.mxu1 %vm2683_vm0, %v3416_v60  ;;  %1413 = vmatpush.msra.mxu0 %v3425_v50  ;;  %v1602_v31 = vsub.f32 %v1600_v42, %v1601_v61 }
 0x118   : > { %951 = vmatmul.f32.gmra.mxu0 %v2936_v27  ;;  %1488 = vmatpush.msra.mxu1 %v2946_v3 }
 0x119   : > { %1417 = vmatpush.msra.mxu0 %v3426_v32  ;;  %v1603_v3 = vand.u32 4294901760, %v1602_v31 }
 0x11a   : > { %1310 = vmatmul.f32.vlgmr.msrb.gmra.mxu2 %v2695_v57  ;;  %1490 = vmatpush.msra.mxu1 %v2962_v51  ;;  %v3429_v57 = vand.u32 4294901760, %v2960_v43 }
 0x11b   : > { %1421 = vmatpush.msra.mxu0 %v3427_v49  ;;  %1727 = vmatpush.msrb.mxu2 %v1583_v34  ;;  %v3443_v34 = vld [vmem:[#allocation24_spill] sm:$0xff] }
 0x11c   : > { %1364 = vmatmul.f32.vlgmr.msrb.gmra.mxu3 %v2700_v63  ;;  %1492 = vmatpush.msra.mxu1 %v2979_v48  ;;  %v3430_v48 = vand.u32 4294901760, %v2977_v10  ;;  %v3431_v63 = vand.u32 4294901760, %v2992_v25  ;;  %v3438_v25 = vld [vmem:[#allocation18_spill] sm:$0xff]  ;;  %v3440_v10 = vld [vmem:[#allocation21_spill] sm:$0xff] }
 0x11d   : > { %1425 = vmatpush.msra.mxu0 %v3428_v14  ;;  %1731 = vmatpush.msrb.mxu2 %v1589_v5 }
 0x11e   : > { %1494 = vmatpush.msra.mxu1 %v2994_v33  ;;  %1604 = vmatpush.msra.mxu3 %v1603_v3 }
 0x11f   : > { %2011 = vmatmul.msk.f32.gmra.mxu1 %vm2711_vm2, %v3416_v60  ;;  %1429 = vmatpush.msra.mxu0 %v3429_v57 }
 0x120   : > { %1119 = vmatmul.f32.vlgmr.msrb.gmra.mxu0 %v2715_v30  ;;  %1496 = vmatpush.msra.mxu1 %v3011_v54  ;;  %v3432_v30 = vand.u32 4294901760, %v3007_v0  ;;  %v3435_v54 = vld [vmem:[#allocation15_spill] sm:$0xff]  ;;  %v3436_v0 = vld [vmem:[#allocation17_spill] sm:$0xff] }
 0x121   : > { %1433 = vmatpush.msra.mxu0 %v3430_v48  ;;  %1770 = vmatpush.msrb.mxu3 %v3071_v52 }
 0x122   : > { %1315 = vmatmul.f32.gmra.mxu2 %v2730_v37  ;;  %1498 = vmatpush.msra.mxu1 %v3018_v53  ;;  %v3433_v37 = vld [vmem:[#allocation16_spill] sm:$0xff] }
 0x123   : > { %1437 = vmatpush.msra.mxu0 %v3431_v63  ;;  %1735 = vmatpush.msrb.mxu2 %v1595_v8  ;;  %v3439_v53 = vld [vmem:[#allocation20_spill] sm:$0xff] }
 0x124   : > { %1680 = vmatpush.msrb.mxu1 %v3071_v52  ;;  %1370 = vmatmul.f32.gmra.mxu3 %v2738_v39  ;;  %v3434_v39 = vand.u32 4294901760, %v3034_v62  ;;  %v3442_v62 = vld [vmem:[#allocation23_spill] sm:$0xff] }
 0x125   : > { %1441 = vmatpush.msra.mxu0 %v3432_v30  ;;  %1772 = vmatpush.msrb.mxu3 %v3097_v19 }
 0x126   : > { %1682 = vmatpush.msrb.mxu1 %v3097_v19  ;;  %1739 = vmatpush.msrb.mxu2 %v1601_v61 }
 0x127   : > { %2012 = vmatmul.msk.f32.gmra.mxu1 %vm2704_vm1, %v3416_v60  ;;  %1445 = vmatpush.msra.mxu0 %v1233_v28 }
 0x128   : > { %1127 = vmatmul.f32.gmra.mxu0 %v3433_v37  ;;  %1774 = vmatpush.msrb.mxu3 %v3122_v16 }
 0x129   : > { %1449 = vmatpush.msra.mxu0 %v3434_v39  ;;  %1684 = vmatpush.msrb.mxu1 %v3122_v16 }
 0x12a   : > { %1320 = vmatmul.f32.gmra.mxu2 %v3435_v54  ;;  %1776 = vmatpush.msrb.mxu3 %v1534_v40 }
 0x12b   : > { %1636 = vmatpush.msrb.mxu0 %v3078_v35  ;;  %1686 = vmatpush.msrb.mxu1 %v1534_v40 }
 0x12c   : > { %1376 = vmatmul.f32.gmra.mxu3 %v3436_v0 }
 0x12d   : > { %1639 = vmatpush.msrb.mxu0 %v3106_v12 }
 0x12f   : > { %1642 = vmatpush.msrb.mxu0 %v3131_v55  ;;  %2013 = vmatmul.msk.f32.gmra.mxu1 %vm2745_vm4, %v3416_v60 }
 0x130   : > { %1135 = vmatmul.f32.gmra.mxu0 %v3437_v45 }
 0x131   : > { %1645 = vmatpush.msrb.mxu0 %v1600_v42 }
 0x132   : > { %1325 = vmatmul.f32.gmra.mxu2 %v3438_v25  ;;  %v1795_v25 = vld [vmem:[%s2416_s0] sm:$0xff] }
 0x134   : > { %v533_v43 = vpop.f32.mrf.mxu1  ;;  %1382 = vmatmul.f32.gmra.mxu3 %v3439_v53 }
 0x137   : > { %2018 = vmatmul.msk.f32.vlgmr.msra.gmra.mxu1 %vm2683_vm0, %v3416_v60 }
 0x138   : > { %1143 = vmatmul.f32.gmra.mxu0 %v3440_v10  ;;  %v3284_v10 = vstv %s2034_s7 }
 0x13a   : > { %1541 = vmatmul.f32.vlgmr.msra.gmra.mxu2 %v3441_v56 }
 0x13c   : > { %v537_v2 = vpop.f32.mrf.mxu1  ;;  %2022 = vmatmul.msk.f32.vlgmr.msra.gmra.mxu3 %vm357_vm5, %v2753_v44 }
 0x13d   : > { %v408_v21 = vpop.f32.mrf.mxu0  ;;  %v599_v51 = vpop.f32.mrf.mxu2 }
 0x13e   : > { %v534_v23 = vadd.f32 %v533_v43, %v408_v21  ;;  %v3281_v43 = vstv %s1794_s22 }
 0x13f   : > { %v653_v33 = vpop.f32.mrf.mxu3  ;;  %2019 = vmatmul.msk.f32.gmra.mxu1 %vm2711_vm2, %v3416_v60 }
 0x140   : > { %2014 = vmatmul.msk.f32.vlgmr.msra.gmra.mxu0 %vm2683_vm0, %v3416_v60 }
 0x142   : > { %1549 = vmatmul.f32.gmra.mxu2 %v3442_v62 }
 0x144   : > { %v541_v28 = vpop.f32.mrf.mxu1  ;;  %2023 = vmatmul.msk.f32.gmra.mxu3 %vm357_vm5, %v2779_v59 }
 0x145   : > { %v416_v16 = vpop.f32.mrf.mxu0  ;;  %v604_v52 = vpop.f32.mrf.mxu2 }
 0x146   : > { %v538_v40 = vadd.f32 %v537_v2, %v416_v16 }
 0x147   : > { %v659_v35 = vpop.f32.mrf.mxu3  ;;  %2020 = vmatmul.msk.f32.gmra.mxu1 %vm2704_vm1, %v3416_v60 }
 0x148   : > { %2015 = vmatmul.msk.f32.gmra.mxu0 %vm2711_vm2, %v3416_v60 }
 0x14a   : > { %1557 = vmatmul.f32.gmra.mxu2 %v3443_v34 }
 0x14c   : > { %v3233_v47 = vpop.f32.mrf.mxu1  ;;  %2024 = vmatmul.msk.f32.gmra.mxu3 %vm357_vm5, %v2813_v15 }
 0x14d   : > { %v424_v19 = vpop.f32.mrf.mxu0  ;;  %v609_v12 = vpop.f32.mrf.mxu2 }
 0x14e   : > { %v542_v32 = vadd.f32 %v541_v28, %v424_v19 }
 0x14f   : > { %v665_v5 = vpop.f32.mrf.mxu3  ;;  %2021 = vmatmul.msk.f32.gmra.mxu1 %vm2745_vm4, %v3416_v60 }
 0x150   : > { %2016 = vmatmul.msk.f32.gmra.mxu0 %vm2704_vm1, %v3416_v60 }
 0x152   : > { %1565 = vmatmul.f32.gmra.mxu2 %v3023_v11 }
 0x154   : > { %v789_v29 = vpop.f32.mrf.mxu1  ;;  %2025 = vmatmul.msk.f32.gmra.mxu3 %vm357_vm5, %v2866_v13 }
 0x155   : > { %v432_v24 = vpop.f32.mrf.mxu0  ;;  %v3246_v4 = vpop.f32.mrf.mxu2 }
 0x157   : > { %v3248_v55 = vpop.f32.mrf.mxu3  ;;  %1690 = vmatmul.f32.vlgmr.msrb.gmra.mxu1 %v2791_v1 }
 0x158   : > { %2017 = vmatmul.msk.f32.gmra.mxu0 %vm2745_vm4, %v3416_v60 }
 0x15a   : > { %2026 = vmatmul.msk.f32.vlgmr.msrb.gmra.mxu2 %vm357_vm5, %v2753_v44 }
 0x15c   : > { %v793_v7 = vpop.f32.mrf.mxu1  ;;  %2030 = vmatmul.msk.f32.vlgmr.msrb.gmra.mxu3 %vm357_vm5, %v2753_v44  ;;  %v600_v44 = vadd.f32 %v599_v51, %v534_v23  ;;  %v1804_v51 = vmul.f32 %v3281_v43, %v1795_v25 }
 0x15d   : > { %v740_v11 = vpop.f32.mrf.mxu0  ;;  %v830_v17 = vpop.f32.mrf.mxu2 }
 0x15f   : > { %v895_v8 = vpop.f32.mrf.mxu3  ;;  %1696 = vmatmul.f32.gmra.mxu1 %v2841_v26 }
 0x160   : > { %1648 = vmatmul.f32.vlgmr.msrb.gmra.mxu0 %v2776_v58 }
 0x162   : > { %2027 = vmatmul.msk.f32.gmra.mxu2 %vm357_vm5, %v2779_v59 }
 0x164   : > { %v797_v1 = vpop.f32.mrf.mxu1  ;;  %2031 = vmatmul.msk.f32.gmra.mxu3 %vm357_vm5, %v2779_v59  ;;  %v654_v59 = vadd.f32 %v653_v33, %v600_v44 }
 0x165   : > { %v744_v41 = vpop.f32.mrf.mxu0  ;;  %v838_v60 = vpop.f32.mrf.mxu2 }
 0x166   : > { %v741_v6 = vadd.f32 %v740_v11, %v654_v59 }
 0x167   : > { %v899_v38 = vpop.f32.mrf.mxu3  ;;  %1702 = vmatmul.f32.gmra.mxu1 %v2904_v20 }
 0x168   : > { %1653 = vmatmul.f32.gmra.mxu0 %v2810_v9  ;;  %v605_v9 = vadd.f32 %v604_v52, %v538_v40  ;;  %v790_v20 = vadd.f32 %v789_v29, %v741_v6  ;;  %v1797_v29 = vld [vmem:[%s2416_s0 + $0x10] sm:$0xff] }
 0x169   : > { %v1806_v11 = vmul.f32 %v3281_v43, %v1797_v29 }
 0x16a   : > { %2028 = vmatmul.msk.f32.gmra.mxu2 %vm357_vm5, %v2813_v15  ;;  %v660_v61 = vadd.f32 %v659_v35, %v605_v9  ;;  %v831_v49 = vadd.f32 %v830_v17, %v790_v20 }
 0x16c   : > { %v3268_v58 = vpop.f32.mrf.mxu1  ;;  %2032 = vmatmul.msk.f32.gmra.mxu3 %vm357_vm5, %v2813_v15  ;;  %v745_v3 = vadd.f32 %v744_v41, %v660_v61 }
 0x16d   : > { %v748_v26 = vpop.f32.mrf.mxu0  ;;  %v846_v46 = vpop.f32.mrf.mxu2 }
 0x16e   : > { %v794_v14 = vadd.f32 %v793_v7, %v745_v3 }
 0x16f   : > { %v903_v18 = vpop.f32.mrf.mxu3  ;;  %1708 = vmatmul.f32.gmra.mxu1 %v2970_v22  ;;  %v610_v22 = vadd.f32 %v609_v12, %v542_v32 }
 0x170   : > { %1658 = vmatmul.f32.gmra.mxu0 %v2872_v36  ;;  %v896_v36 = vadd.f32 %v895_v8, %v831_v49  ;;  %v839_v54 = vadd.f32 %v838_v60, %v794_v14  ;;  %v1801_v49 = vld [vmem:[%s2416_s0 + $0x30] sm:$0xff] }
 0x171   : > { %v666_v30 = vadd.f32 %v665_v5, %v610_v22 }
 0x172   : > { %2029 = vmatmul.msk.f32.gmra.mxu2 %vm357_vm5, %v2866_v13  ;;  %v900_v56 = vadd.f32 %v899_v38, %v839_v54 }
 0x173   : > { %v749_v0 = vadd.f32 %v748_v26, %v666_v30 }
 0x174   : > { %v979_v42 = vpop.f32.mrf.mxu1  ;;  %2033 = vmatmul.msk.f32.gmra.mxu3 %vm357_vm5, %v2866_v13  ;;  %v546_v13 = vadd.f32 %v3233_v47, %v432_v24 }
 0x175   : > { %v752_v15 = vpop.f32.mrf.mxu0  ;;  %v854_v50 = vpop.f32.mrf.mxu2  ;;  %v798_v2 = vadd.f32 %v797_v1, %v749_v0 }
 0x177   : > { %v907_v31 = vpop.f32.mrf.mxu3  ;;  %v847_v47 = vadd.f32 %v846_v46, %v798_v2  ;;  %v1799_v46 = vld [vmem:[%s2416_s0 + $0x20] sm:$0xff] }
 0x178   : > { %1663 = vmatmul.f32.gmra.mxu0 %v2936_v27  ;;  %v615_v27 = vadd.f32 %v3246_v4, %v546_v13 }
 0x179   : > { %v904_v4 = vadd.f32 %v903_v18, %v847_v47  ;;  %v1808_v18 = vmul.f32 %v3281_v43, %v1799_v46 }
 0x17a   : > { %v672_v16 = vadd.f32 %v3248_v55, %v615_v27 }
 0x17c   : > { %v985_v57 = vpop.f32.mrf.mxu1  ;;  %v753_v19 = vadd.f32 %v752_v15, %v672_v16 }
 0x17d   : > { %v937_v48 = vpop.f32.mrf.mxu0  ;;  %v1030_v63 = vpop.f32.mrf.mxu2 }
 0x17e   : > { %v938_v37 = vadd.f32 %v937_v48, %v896_v36  ;;  %v802_v55 = vadd.f32 %v3268_v58, %v753_v19  ;;  %v1810_v36 = vmul.f32 %v3281_v43, %v1801_v49 }
 0x17f   : > { %v1067_v39 = vpop.f32.mrf.mxu3 }
 0x180   : > { %v980_v45 = vadd.f32 %v979_v42, %v938_v37  ;;  %v855_v38 = vadd.f32 %v854_v50, %v802_v55 }
 0x182   : > { %v1031_v53 = vadd.f32 %v1030_v63, %v980_v45  ;;  %v908_v40 = vadd.f32 %v907_v31, %v855_v38 }
 0x184   : > { %v1068_v21 = vadd.f32 %v1067_v39, %v1031_v53  ;;  %v991_v33 = vpop.f32.mrf.mxu1 }
 0x185   : > { %v942_v62 = vpop.f32.mrf.mxu0  ;;  %v1034_v28 = vpop.f32.mrf.mxu2 }
 0x186   : > { %v1814_v52 = vmul.f32 %v3284_v10, %v1068_v21  ;;  %v943_v35 = vadd.f32 %v942_v62, %v900_v56 }
 0x187   : > { %v1071_v34 = vpop.f32.mrf.mxu3 }
 0x188   : > { %v1822_v12 = vadd.f32 %v1814_v52, %v1804_v51  ;;  %v986_v5 = vadd.f32 %v985_v57, %v943_v35 }
 0x18a   : > { %1830 = vst [vmem:[%s3292_s25] sm:$0xff] %v1822_v12  ;;  %v1035_v24 = vadd.f32 %v1034_v28, %v986_v5 }
 0x18c   : > { %v1072_v7 = vadd.f32 %v1071_v34, %v1035_v24  ;;  %v997_v17 = vpop.f32.mrf.mxu1 }
 0x18d   : > { %v947_v8 = vpop.f32.mrf.mxu0  ;;  %v1038_v1 = vpop.f32.mrf.mxu2 }
 0x18e   : > { %v1816_v41 = vmul.f32 %v3284_v10, %v1072_v7  ;;  %v948_v60 = vadd.f32 %v947_v8, %v904_v4 }
 0x18f   : > { %v1075_v23 = vpop.f32.mrf.mxu3 }
 0x190   : > { %v1824_v44 = vadd.f32 %v1816_v41, %v1806_v11  ;;  %v992_v26 = vadd.f32 %v991_v33, %v948_v60 }
 0x192   : > { %1832 = vst [vmem:[%s3292_s25 + $0x10] sm:$0xff] %v1824_v44  ;;  %v1039_v59 = vadd.f32 %v1038_v1, %v992_v26 }
 0x194   : > { %v1076_v58 = vadd.f32 %v1075_v23, %v1039_v59  ;;  %v1245_v6 = vpop.f32.mrf.mxu1 }
 0x195   : > { %v952_v9 = vpop.f32.mrf.mxu0  ;;  %v1042_v20 = vpop.f32.mrf.mxu2 }
 0x196   : > { %v1818_v42 = vmul.f32 %v3284_v10, %v1076_v58  ;;  %v953_v15 = vadd.f32 %v952_v9, %v908_v40 }
 0x197   : > { %v1079_v61 = vpop.f32.mrf.mxu3 }
 0x198   : > { %v1826_v50 = vadd.f32 %v1818_v42, %v1808_v18  ;;  %v998_v32 = vadd.f32 %v997_v17, %v953_v15 }
 0x19a   : > { %1834 = vst [vmem:[%s3292_s25 + $0x20] sm:$0xff] %v1826_v50  ;;  %v1043_v3 = vadd.f32 %v1042_v20, %v998_v32  ;;  %v1796_v32 = vld [vmem:[%s2416_s0 + $0x8] sm:$0xff] }
 0x19c   : > { %v1080_v22 = vadd.f32 %v1079_v61, %v1043_v3  ;;  %v1249_v31 = vpop.f32.mrf.mxu1 }
 0x19d   : > { %v1120_v14 = vpop.f32.mrf.mxu0  ;;  %v1311_v57 = vpop.f32.mrf.mxu2 }
 0x19e   : > { %v1820_v48 = vmul.f32 %v3284_v10, %v1080_v22  ;;  %v1246_v34 = vadd.f32 %v1245_v6, %v1120_v14 }
 0x19f   : > { %v1365_v63 = vpop.f32.mrf.mxu3 }
 0x1a0   : > { %v1828_v30 = vadd.f32 %v1820_v48, %v1810_v36  ;;  %v1312_v19 = vadd.f32 %v1311_v57, %v1246_v34  ;;  %v1805_v57 = vmul.f32 %v3281_v43, %v1796_v32 }
 0x1a2   : > { %1836 = vst [vmem:[%s3292_s25 + $0x30] sm:$0xff] %v1828_v30  ;;  %v1366_v29 = vadd.f32 %v1365_v63, %v1312_v19 }
 0x1a4   : > { %v1253_v13 = vpop.f32.mrf.mxu1 }
 0x1a5   : > { %v1128_v37 = vpop.f32.mrf.mxu0  ;;  %v1316_v39 = vpop.f32.mrf.mxu2 }
 0x1a6   : > { %v1250_v24 = vadd.f32 %v1249_v31, %v1128_v37 }
 0x1a7   : > { %v1371_v54 = vpop.f32.mrf.mxu3 }
 0x1a8   : > { %v1317_v11 = vadd.f32 %v1316_v39, %v1250_v24 }
 0x1aa   : > { %v1372_v41 = vadd.f32 %v1371_v54, %v1317_v11 }
 0x1ac   : > { %v1257_v0 = vpop.f32.mrf.mxu1 }
 0x1ad   : > { %v1136_v45 = vpop.f32.mrf.mxu0  ;;  %v1321_v25 = vpop.f32.mrf.mxu2 }
 0x1ae   : > { %v1254_v60 = vadd.f32 %v1253_v13, %v1136_v45 }
 0x1af   : > { %v1377_v27 = vpop.f32.mrf.mxu3 }
 0x1b0   : > { %v1322_v46 = vadd.f32 %v1321_v25, %v1254_v60  ;;  %v1802_v60 = vld [vmem:[%s2416_s0 + $0x38] sm:$0xff] }
 0x1b2   : > { %v1378_v6 = vadd.f32 %v1377_v27, %v1322_v46  ;;  %v1798_v27 = vld [vmem:[%s2416_s0 + $0x18] sm:$0xff] }
 0x1b4   : > { %v1501_v53 = vpop.f32.mrf.mxu1 }
 0x1b5   : > { %v1144_v56 = vpop.f32.mrf.mxu0  ;;  %v1326_v2 = vpop.f32.mrf.mxu2 }
 0x1b6   : > { %v1258_v9 = vadd.f32 %v1257_v0, %v1144_v56 }
 0x1b7   : > { %v1383_v21 = vpop.f32.mrf.mxu3 }
 0x1b8   : > { %v1327_v49 = vadd.f32 %v1326_v2, %v1258_v9 }
 0x1ba   : > { %v1384_v30 = vadd.f32 %v1383_v21, %v1327_v49 }
 0x1bc   : > { %v1505_v51 = vpop.f32.mrf.mxu1 }
 0x1bd   : > { %v1452_v33 = vpop.f32.mrf.mxu0  ;;  %v1542_v62 = vpop.f32.mrf.mxu2 }
 0x1be   : > { %v1453_v7 = vadd.f32 %v1452_v33, %v1366_v29  ;;  %v1807_v33 = vmul.f32 %v3281_v43, %v1798_v27 }
 0x1bf   : > { %v1607_v28 = vpop.f32.mrf.mxu3 }
 0x1c0   : > { %v1502_v17 = vadd.f32 %v1501_v53, %v1453_v7 }
 0x1c2   : > { %v1543_v38 = vadd.f32 %v1542_v62, %v1502_v17 }
 0x1c4   : > { %v1509_v16 = vpop.f32.mrf.mxu1  ;;  %v1608_v59 = vadd.f32 %v1607_v28, %v1543_v38 }
 0x1c5   : > { %v1456_v52 = vpop.f32.mrf.mxu0  ;;  %v1550_v35 = vpop.f32.mrf.mxu2 }
 0x1c6   : > { %v1457_v44 = vadd.f32 %v1456_v52, %v1372_v41 }
 0x1c7   : > { %v1611_v47 = vpop.f32.mrf.mxu3 }
 0x1c8   : > { %v1506_v40 = vadd.f32 %v1505_v51, %v1457_v44 }
 0x1ca   : > { %v1551_v15 = vadd.f32 %v1550_v35, %v1506_v40 }
 0x1cc   : > { %v1513_v4 = vpop.f32.mrf.mxu1  ;;  %v1612_v36 = vadd.f32 %v1611_v47, %v1551_v15 }
 0x1cd   : > { %v1460_v12 = vpop.f32.mrf.mxu0  ;;  %v1558_v5 = vpop.f32.mrf.mxu2 }
 0x1ce   : > { %v1461_v61 = vadd.f32 %v1460_v12, %v1378_v6  ;;  %v1800_v12 = vld [vmem:[%s2416_s0 + $0x28] sm:$0xff]  ;;  %s2216_s0 = scalar_lea.hbm %s3361_s4, 128 }
 0x1cf   : > { %v1615_v55 = vpop.f32.mrf.mxu3  ;;  %p2218_p5 = scmp.lt.s32.totalorder %s2216_s0, %s2212_s30 }
 0x1d0   : > { %v1510_v31 = vadd.f32 %v1509_v16, %v1461_v61 }
 0x1d1   : > { %p2219_p8 = por %p2218_p5, %p2217_p7 }
 0x1d2   : > { %v1559_v54 = vadd.f32 %v1558_v5, %v1510_v31 }
 0x1d3   : > { %p2220_p9 = pnand %p2219_p8, %p2215_p0 }
 0x1d4   : > { %v1691_v26 = vpop.f32.mrf.mxu1  ;;  %v1616_v56 = vadd.f32 %v1615_v55, %v1559_v54 }
 0x1d5   : > { %v1464_v8 = vpop.f32.mrf.mxu0  ;;  %v1566_v1 = vpop.f32.mrf.mxu2 }
 0x1d6   : > { %v1465_v0 = vadd.f32 %v1464_v8, %v1384_v30 }
 0x1d7   : > { %v1619_v23 = vpop.f32.mrf.mxu3 }
 0x1d8   : > { %v1514_v2 = vadd.f32 %v1513_v4, %v1465_v0  ;;  %v1809_v4 = vmul.f32 %v3281_v43, %v1800_v12 }
 0x1da   : > { %v1567_v35 = vadd.f32 %v1566_v1, %v1514_v2 }
 0x1dc   : > { %v1697_v22 = vpop.f32.mrf.mxu1  ;;  %v1620_v29 = vadd.f32 %v1619_v23, %v1567_v35 }
 0x1dd   : > { %v1649_v58 = vpop.f32.mrf.mxu0  ;;  %v1742_v18 = vpop.f32.mrf.mxu2 }
 0x1de   : > { %v1650_v20 = vadd.f32 %v1649_v58, %v1608_v59 }
 0x1df   : > { %v1779_v42 = vpop.f32.mrf.mxu3 }
 0x1e0   : > { %v1692_v50 = vadd.f32 %v1691_v26, %v1650_v20  ;;  %v1811_v26 = vmul.f32 %v3281_v43, %v1802_v60 }
 0x1e2   : > { %v1743_v3 = vadd.f32 %v1742_v18, %v1692_v50 }
 0x1e4   : > { %v1780_v14 = vadd.f32 %v1779_v42, %v1743_v3  ;;  %v1703_v62 = vpop.f32.mrf.mxu1 }
 0x1e5   : > { %v1654_v48 = vpop.f32.mrf.mxu0  ;;  %v1746_v63 = vpop.f32.mrf.mxu2 }
 0x1e6   : > { %v1815_v13 = vmul.f32 %v3284_v10, %v1780_v14  ;;  %v1655_v37 = vadd.f32 %v1654_v48, %v1612_v36 }
 0x1e7   : > { %v1783_v39 = vpop.f32.mrf.mxu3 }
 0x1e8   : > { %v1823_v45 = vadd.f32 %v1815_v13, %v1805_v57  ;;  %v1698_v25 = vadd.f32 %v1697_v22, %v1655_v37 }
 0x1ea   : > { %1831 = vst [vmem:[%s3292_s25 + $0x8] sm:$0xff] %v1823_v45  ;;  %v1747_v53 = vadd.f32 %v1746_v63, %v1698_v25 }
 0x1ec   : > { %v1784_v51 = vadd.f32 %v1783_v39, %v1747_v53  ;;  %v1709_v17 = vpop.f32.mrf.mxu1 }
 0x1ed   : > { %v1659_v21 = vpop.f32.mrf.mxu0  ;;  %v1750_v52 = vpop.f32.mrf.mxu2 }
 0x1ee   : > { %v1817_v28 = vmul.f32 %v3284_v10, %v1784_v51  ;;  %v1660_v16 = vadd.f32 %v1659_v21, %v1616_v56 }
 0x1ef   : > { %v1787_v19 = vpop.f32.mrf.mxu3 }
 0x1f0   : > { %v1825_v34 = vadd.f32 %v1817_v28, %v1807_v33  ;;  %v1704_v47 = vadd.f32 %v1703_v62, %v1660_v16 }
 0x1f2   : > { %1833 = vst [vmem:[%s3292_s25 + $0x18] sm:$0xff] %v1825_v34  ;;  %v1751_v5 = vadd.f32 %v1750_v52, %v1704_v47 }
 0x1f4   : > { %v1788_v24 = vadd.f32 %v1787_v19, %v1751_v5 }
 0x1f5   : > { %v1664_v55 = vpop.f32.mrf.mxu0  ;;  %v1754_v41 = vpop.f32.mrf.mxu2 }
 0x1f6   : > { %v1819_v7 = vmul.f32 %v3284_v10, %v1788_v24  ;;  %v1665_v11 = vadd.f32 %v1664_v55, %v1620_v29 }
 0x1f7   : > { %v1791_v38 = vpop.f32.mrf.mxu3 }
 0x1f8   : > { %v1827_v8 = vadd.f32 %v1819_v7, %v1809_v4  ;;  %v1710_v1 = vadd.f32 %v1709_v17, %v1665_v11 }
 0x1fa   : > { %1835 = vst [vmem:[%s3292_s25 + $0x28] sm:$0xff] %v1827_v8  ;;  %v1755_v23 = vadd.f32 %v1754_v41, %v1710_v1 }
 0x1fc   : > { %v1792_v44 = vadd.f32 %v1791_v38, %v1755_v23 }
 0x1fe   : > { %v1821_v46 = vmul.f32 %v3284_v10, %v1792_v44 }
 0x200   : > { %v1829_v59 = vadd.f32 %v1821_v46, %v1811_v26 }
 0x202   : > { %1837 = vst [vmem:[%s3292_s25 + $0x38] sm:$0xff] %v1829_v59 }
 0x203   : > { %2223 = shalt.err (!%p2220_p9)
}
 0x204   : > { %s2279_s14 = smov 256   ;;  %s2280_s29 = smov 16  }
 0x205   : > { %2055 = dma.vmem_to_hbm [thread:$0]  (%p2358_p11), %s1853_s9, 1024, %s1855_s19, %s1839_s13, %s2279_s14, %s2279_s14, %s2280_s29  }
 0x206 PF: > { %s1869_s10 = sand.u32 1, %s2258_s15   ;;  %p3444_p10 = scmp.ge.s32.totalorder %s2270_s18, 2 }
 0x207   : > { %s1870_s20 = scalar_lea.sflag [#allocation4], %s1869_s10 }
 0x208   : > { %p2069_p1 = pnand %p3444_p10, %p2362_p12 }
 0x20a   : > { %p2070_p2 = pneg %p2069_p1 }
 0x20c   : > { %2253 = dma.done.wait (%p2070_p2), %s1870_s20, 1024  }
 0x20d   : > { %2255 = vsyncadd (%p2070_p2), %s1870_s20, 4294966272  ;;  %s3445_s22 = sld [smem:[#allocation14_spill]]  ;;  %p19_p3 = scmp.ge.s32.totalorder %s2331_s21, 4  }
 0x20e   : > { %s3446_s15 = smov %s2262_s16  ;;  %s3447_s16 = smov %s2266_s17 }
 0x20f   : > { %s3449_s18 = smov %s2331_s21  ;;  %21 = sbr.rel (!%p19_p3) target bundleno = 10 (0xa), region = 93 }
 0x213   : > { %s3448_s17 = smov %s3445_s22 }
 0x214   :  { %1876 = vsyncpa [#allocation3], 1 }
 0x215   :  { %1878 = vsyncpa [#allocation3 + $0x1], 1 }
 0x216   :  { %1879 = vsyncpa [#allocation8], 1 }
 0x217   :  { %1880 = vsyncpa [#allocation4], 1 }
 0x218   :  { %1882 = vsyncpa [#allocation4 + $0x1], 1 }
 0x219   :  { %1883 = vsyncpa [#allocation5], 1 }
 0x21a   :  { %1885 = vsyncpa [#allocation5 + $0x1], 1 }

</bundles_post_ra>
